<compile_context>
chip_gen: v7x
topology: tpu7x:2x2x1
jax: 0.10.0
libtpu: 0.0.40
codegen_flags: <defaults>
</compile_context>

<pallas_src>
import functools

import jax
import jax.numpy as jnp
from jax.experimental import pallas as pl
from jax.experimental.pallas import tpu as pltpu

# Contract the last dim of the lhs with the last dim of the rhs (native
# PyTorch (out, in) weight layout -> y = x @ W^T without any transpose).
_CONTRACT_LAST = (((1,), (1,)), ((), ()))


# ----------------------------------------------------------------------------
# Router gate: router_logits = x @ gate_w^T
# ----------------------------------------------------------------------------
def _gate_kernel(x_ref, w_ref, o_ref):
    o_ref[...] = jax.lax.dot_general(
        x_ref[...], w_ref[...], _CONTRACT_LAST,
        preferred_element_type=jnp.float32,
    ).astype(o_ref.dtype)


def gate_linear(x, gate_w):
    """x: (T, H); gate_w: (E, H) in native PyTorch layout. Returns f32 (T, E)."""
    num_tokens, _ = x.shape
    num_experts = gate_w.shape[0]
    return pl.pallas_call(
        _gate_kernel,
        out_shape=jax.ShapeDtypeStruct((num_tokens, num_experts), jnp.float32),
    )(x, gate_w)


# ----------------------------------------------------------------------------
# Routing (plain JAX: data-dependent top-k / scatter)
# ----------------------------------------------------------------------------
def compute_routing_weights(router_logits, e_score_correction_bias, *,
                            top_k, n_group, topk_group):
    """Mirrors the PyTorch (non-ipex) routing path.

    Returns dense (T, E) routing weights: zero for unselected experts,
    normalized sigmoid scores for the selected top_k experts.
    """
    num_tokens, num_experts = router_logits.shape
    experts_per_group = num_experts // n_group

    scores = jax.nn.sigmoid(router_logits)
    scores_for_choice = scores + e_score_correction_bias[None, :]

    grouped = scores_for_choice.reshape(num_tokens, n_group, experts_per_group)
    group_scores = jnp.sum(jax.lax.top_k(grouped, 2)[0], axis=-1)        # (T, G)
    group_idx = jax.lax.top_k(group_scores, topk_group)[1]               # (T, kg)
    group_mask = jnp.sum(
        jax.nn.one_hot(group_idx, n_group, dtype=scores.dtype), axis=1)  # (T, G)
    score_mask = jnp.repeat(group_mask, experts_per_group, axis=-1)      # (T, E)
    tmp_scores = jnp.where(score_mask > 0.5, scores_for_choice, 0.0)

    selected_experts = jax.lax.top_k(tmp_scores, top_k)[1]               # (T, k)
    routing_weights = jnp.take_along_axis(scores, selected_experts, axis=1)
    routing_weights = routing_weights / jnp.sum(
        routing_weights, axis=-1, keepdims=True)

    dense = jnp.sum(
        jax.nn.one_hot(selected_experts, num_experts,
                       dtype=routing_weights.dtype) * routing_weights[..., None],
        axis=1)                                                          # (T, E)
    return dense


# ----------------------------------------------------------------------------
# Fused MoE expert MLP kernel
# ----------------------------------------------------------------------------
def _moe_expert_kernel(x_ref, w1_ref, w3_ref, w2_ref, rw_ref, o_ref, acc_ref):
    """Grid = (token_tiles, experts); expert axis is the reduction (last)."""
    e = pl.program_id(1)

    @pl.when(e == 0)
    def _():
        acc_ref[...] = jnp.zeros_like(acc_ref)

    x = x_ref[...]          # (tm, H)
    w1 = w1_ref[0]          # (I, H) native (out, in) layout
    w3 = w3_ref[0]          # (I, H)
    w2 = w2_ref[0]          # (H, I)

    g = jax.lax.dot_general(x, w1, _CONTRACT_LAST,
                            preferred_element_type=jnp.float32)          # (tm, I)
    u = jax.lax.dot_general(x, w3, _CONTRACT_LAST,
                            preferred_element_type=jnp.float32)          # (tm, I)
    h = (g * jax.nn.sigmoid(g)) * u                                      # SiLU-gate, f32
    y = jax.lax.dot_general(h.astype(x.dtype), w2, _CONTRACT_LAST,
                            preferred_element_type=jnp.float32)          # (tm, H)

    # Per-token routing weight of *this* expert (0.0 if not selected):
    # select column `e` of the dense (tm, E) routing-weight tile.
    rw = rw_ref[...].astype(jnp.float32)                                 # (tm, E)
    col = jax.lax.broadcasted_iota(jnp.int32, rw.shape, dimension=1)
    w_e = jnp.sum(jnp.where(col == e, rw, 0.0), axis=-1, keepdims=True)  # (tm, 1)

    acc_ref[...] += w_e * y

    @pl.when(e == pl.num_programs(1) - 1)
    def _():
        o_ref[...] = acc_ref[...].astype(o_ref.dtype)


def moe_experts(x, w1, w3, w2, dense_routing_weights, *, token_tile=None,
                vmem_limit_bytes=None):
    """x: (T, H); w1, w3: (E, I, H); w2: (E, H, I); dense weights: (T, E)."""
    num_tokens, hidden = x.shape
    num_experts, inter, _ = w1.shape

    # Keep the token tile as large as possible (x rows are tiny) so each
    # expert's weights are streamed from HBM exactly once per token tile.
    tm = token_tile if token_tile is not None else min(num_tokens, 256)
    assert num_tokens % tm == 0, "token count must be divisible by the token tile"
    assert tm == num_tokens or tm % 8 == 0, "token tile must satisfy the (8,128) rule"

    # TODO(synk): optionally cast x / expert weights to bf16 (keeping the f32
    # accumulator) for ~2x HBM-bandwidth win at reduced precision.
    return pl.pallas_call(
        _moe_expert_kernel,
        out_shape=jax.ShapeDtypeStruct((num_tokens, hidden), x.dtype),
        grid_spec=pltpu.PrefetchScalarGridSpec(
            num_scalar_prefetch=0,
            grid=(num_tokens // tm, num_experts),
            in_specs=[
                pl.BlockSpec((tm, hidden), lambda ti, ei: (ti, 0)),        # x
                pl.BlockSpec((1, inter, hidden), lambda ti, ei: (ei, 0, 0)),  # w1
                pl.BlockSpec((1, inter, hidden), lambda ti, ei: (ei, 0, 0)),  # w3
                pl.BlockSpec((1, hidden, inter), lambda ti, ei: (ei, 0, 0)),  # w2
                pl.BlockSpec((tm, num_experts), lambda ti, ei: (ti, 0)),   # routing w
            ],
            out_specs=pl.BlockSpec((tm, hidden), lambda ti, ei: (ti, 0)),
            scratch_shapes=[pltpu.VMEM((tm, hidden), jnp.float32)],
        ),
        compiler_params=pltpu.CompilerParams(
            # Token axis parallel (v7x dual-TC / megacore); expert axis is the
            # accumulation axis -> "arbitrary" and last.
            dimension_semantics=("parallel", "arbitrary"),
            # For production shapes raise this per generation (e.g. 48<<20 on
            # v5e/v6e; keep weight blocks <= ~8 MiB on v7x's 64 MiB VMEM).
            vmem_limit_bytes=vmem_limit_bytes,
        ),
    )(x, w1, w3, w2, dense_routing_weights.astype(x.dtype))


# ----------------------------------------------------------------------------
# Full Deepseekv3MoE forward (non-ipex path)
# ----------------------------------------------------------------------------
@functools.partial(
    jax.jit,
    static_argnames=("top_k", "n_group", "topk_group", "token_tile",
                     "vmem_limit_bytes"))
def deepseekv3_moe(hidden_states, gate_w, w1, w3, w2, e_score_correction_bias,
                   *, top_k, n_group, topk_group, token_tile=None,
                   vmem_limit_bytes=None):
    router_logits = gate_linear(hidden_states, gate_w)
    dense_rw = compute_routing_weights(
        router_logits, e_score_correction_bias,
        top_k=top_k, n_group=n_group, topk_group=topk_group)
    return moe_experts(hidden_states, w1, w3, w2, dense_rw,
                       token_tile=token_tile,
                       vmem_limit_bytes=vmem_limit_bytes)


# ----------------------------------------------------------------------------
# Plain-JAX reference for the expert MLP (dense-over-experts formulation)
# ----------------------------------------------------------------------------
def moe_expert_reference(x, w1, w3, w2, dense_rw):
    g = jnp.einsum("th,eih->tei", x, w1)
    u = jnp.einsum("th,eih->tei", x, w3)
    h = (g * jax.nn.sigmoid(g)) * u
    per_expert = jnp.einsum("tei,ehi->teh", h, w2)
    return jnp.einsum("te,teh->th", dense_rw.astype(x.dtype), per_expert)


if __name__ == "__main__":
    key = jax.random.PRNGKey(0)
    k_x, k_gate, k_w1, k_w3, k_w2 = jax.random.split(key, 5)

    # Small shapes consistent with the module (hidden_states: (num_tokens, hidden)).
    num_tokens = 8
    hidden_size = 256
    intermediate_size = 512
    n_routed_experts = 16          # n_group=8 -> 2 experts per group
    num_experts_per_tok = 4
    n_group = 8
    topk_group = 4

    x = jax.random.normal(k_x, (num_tokens, hidden_size), dtype=jnp.float32)
    # torch.rand-style (uniform [0, 1)) weights, as in the module definition.
    gate_w = jax.random.uniform(
        k_gate, (n_routed_experts, hidden_size), dtype=jnp.float32)
    w1 = jax.random.uniform(
        k_w1, (n_routed_experts, intermediate_size, hidden_size), dtype=jnp.float32)
    w3 = jax.random.uniform(
        k_w3, (n_routed_experts, intermediate_size, hidden_size), dtype=jnp.float32)
    w2 = jax.random.uniform(
        k_w2, (n_routed_experts, hidden_size, intermediate_size), dtype=jnp.float32)
    bias = jnp.ones((n_routed_experts,), dtype=jnp.float32)

    y = deepseekv3_moe(x, gate_w, w1, w3, w2, bias,
                       top_k=num_experts_per_tok, n_group=n_group,
                       topk_group=topk_group)
    y = jax.block_until_ready(y)
    assert y.shape == (num_tokens, hidden_size)

    # --- sanity checks against plain-JAX references -------------------------
    # Gate kernel vs dense matmul (loose tolerance: default f32 matmul
    # precision on the MXU).
    logits_pallas = gate_linear(x, gate_w)
    logits_ref = x @ gate_w.T
    gate_err = float(jnp.max(jnp.abs(logits_pallas - logits_ref))
                     / (jnp.max(jnp.abs(logits_ref)) + 1e-6))
    assert gate_err < 3e-2, f"gate relative error too large: {gate_err}"

    # Full forward: reuse the kernel-produced logits for routing so the
    # discrete top-k selections are identical, then compare the fused expert
    # kernel against an einsum reference.
    dense_rw = compute_routing_weights(
        logits_pallas, bias, top_k=num_experts_per_tok,
        n_group=n_group, topk_group=topk_group)
    ref = moe_expert_reference(x, w1, w3, w2, dense_rw)
    rel_err = float(jnp.max(jnp.abs(y - ref)) / (jnp.max(jnp.abs(ref)) + 1e-6))
    assert rel_err < 3e-2, f"moe relative error too large: {rel_err}"

    print("KERNEL_OK")
</pallas_src>

<mosaic_0001>
module attributes {stable_mosaic.version = 11 : i64} {
  func.func @_gate_kernel(%arg0: memref<8x256xf32, #tpu.memory_space<vmem>>, %arg1: memref<16x256xf32, #tpu.memory_space<vmem>>, %arg2: memref<8x16xf32, #tpu.memory_space<vmem>>) attributes {dimension_semantics = [], scalar_prefetch = 0 : i64, scratch_operands = 0 : i64, tpu.core_type = #tpu.core_type<tc>} {
    %c0 = arith.constant 0 : index
    %c0_0 = arith.constant 0 : index
    %0 = vector.load %arg0[%c0, %c0_0] : memref<8x256xf32, #tpu.memory_space<vmem>>, vector<8x256xf32>
    %c0_1 = arith.constant 0 : index
    %c0_2 = arith.constant 0 : index
    %1 = vector.load %arg1[%c0_1, %c0_2] : memref<16x256xf32, #tpu.memory_space<vmem>>, vector<16x256xf32>
    %cst = arith.constant dense<0.000000e+00> : vector<8x16xf32>
    %2 = tpu.matmul %0, %1, %cst {dimension_numbers = #tpu.dot_dimension_numbers<[1], [1], [0], [0], [0, 0, 1, 0], [], []>} : vector<8x256xf32>, vector<16x256xf32>, vector<8x16xf32> -> vector<8x16xf32>
    %c0_3 = arith.constant 0 : index
    %c0_4 = arith.constant 0 : index
    %3 = vector.load %arg2[%c0_3, %c0_4] : memref<8x16xf32, #tpu.memory_space<vmem>>, vector<8x16xf32>
    tpu.vector_store %arg2[%c0_3, %c0_4], %2 {strides = array<i32>} : memref<8x16xf32, #tpu.memory_space<vmem>>, vector<8x16xf32>,
    return
  }
}

module attributes {stable_mosaic.version = 11 : i64} {
  func.func @_moe_expert_kernel(%arg0: i32, %arg1: i32, %arg2: memref<8x256xf32, #tpu.memory_space<vmem>>, %arg3: memref<1x512x256xf32, #tpu.memory_space<vmem>>, %arg4: memref<1x512x256xf32, #tpu.memory_space<vmem>>, %arg5: memref<1x256x512xf32, #tpu.memory_space<vmem>>, %arg6: memref<8x16xf32, #tpu.memory_space<vmem>>, %arg7: memref<8x256xf32, #tpu.memory_space<vmem>>, %arg8: memref<8x256xf32, #tpu.memory_space<vmem>>) attributes {dimension_semantics = [#tpu.dimension_semantics<parallel>, #tpu.dimension_semantics<arbitrary>], iteration_bounds = array<i64: 1, 16>, scalar_prefetch = 0 : i64, scratch_operands = 1 : i64, tpu.core_type = #tpu.core_type<tc>, window_params = [{transform_indices = @transform_0, window_bounds = array<i64: 8, 256>}, {transform_indices = @transform_1, window_bounds = array<i64: 1, 512, 256>}, {transform_indices = @transform_2, window_bounds = array<i64: 1, 512, 256>}, {transform_indices = @transform_3, window_bounds = array<i64: 1, 256, 512>}, {transform_indices = @transform_4, window_bounds = array<i64: 8, 16>}, {transform_indices = @transform_5, window_bounds = array<i64: 8, 256>}]} {
    %c0_i32 = arith.constant 0 : i32
    %0 = arith.cmpi eq, %arg1, %c0_i32 : i32
    %1 = arith.extui %0 : i1 to i32
    %c0_i32_0 = arith.constant 0 : i32
    %2 = arith.cmpi ne, %1, %c0_i32_0 : i32
    scf.if %2 {
      %cst_23 = arith.constant 0.000000e+00 : f32
      %36 = vector.broadcast %cst_23 : f32 to vector<8x256xf32>
      %c0_24 = arith.constant 0 : index
      %c0_25 = arith.constant 0 : index
      %37 = vector.load %arg8[%c0_24, %c0_25] : memref<8x256xf32, #tpu.memory_space<vmem>>, vector<8x256xf32>
      tpu.vector_store %arg8[%c0_24, %c0_25], %36 {strides = array<i32>} : memref<8x256xf32, #tpu.memory_space<vmem>>, vector<8x256xf32>,
    } else {
    }
    %c0 = arith.constant 0 : index
    %c0_1 = arith.constant 0 : index
    %3 = vector.load %arg2[%c0, %c0_1] : memref<8x256xf32, #tpu.memory_space<vmem>>, vector<8x256xf32>
    %c0_2 = arith.constant 0 : index
    %c0_3 = arith.constant 0 : index
    %c0_4 = arith.constant 0 : index
    %4 = vector.load %arg3[%c0_2, %c0_3, %c0_4] : memref<1x512x256xf32, #tpu.memory_space<vmem>>, vector<1x512x256xf32>
    %5 = vector.shape_cast %4 : vector<1x512x256xf32> to vector<512x256xf32>
    %c0_5 = arith.constant 0 : index
    %c0_6 = arith.constant 0 : index
    %c0_7 = arith.constant 0 : index
    %6 = vector.load %arg4[%c0_5, %c0_6, %c0_7] : memref<1x512x256xf32, #tpu.memory_space<vmem>>, vector<1x512x256xf32>
    %7 = vector.shape_cast %6 : vector<1x512x256xf32> to vector<512x256xf32>
    %c0_8 = arith.constant 0 : index
    %c0_9 = arith.constant 0 : index
    %c0_10 = arith.constant 0 : index
    %8 = vector.load %arg5[%c0_8, %c0_9, %c0_10] : memref<1x256x512xf32, #tpu.memory_space<vmem>>, vector<1x256x512xf32>
    %9 = vector.shape_cast %8 : vector<1x256x512xf32> to vector<256x512xf32>
    %cst = arith.constant dense<0.000000e+00> : vector<8x512xf32>
    %10 = tpu.matmul %3, %5, %cst {dimension_numbers = #tpu.dot_dimension_numbers<[1], [1], [0], [0], [0, 0, 1, 0], [], []>} : vector<8x256xf32>, vector<512x256xf32>, vector<8x512xf32> -> vector<8x512xf32>
    %cst_11 = arith.constant dense<0.000000e+00> : vector<8x512xf32>
    %11 = tpu.matmul %3, %7, %cst_11 {dimension_numbers = #tpu.dot_dimension_numbers<[1], [1], [0], [0], [0, 0, 1, 0], [], []>} : vector<8x256xf32>, vector<512x256xf32>, vector<8x512xf32> -> vector<8x512xf32>
    %12 = arith.negf %10 : vector<8x512xf32>
    %13 = math.exp %12 : vector<8x512xf32>
    %cst_12 = arith.constant 1.000000e+00 : f32
    %14 = vector.broadcast %cst_12 : f32 to vector<8x512xf32>
    %15 = arith.addf %14, %13 : vector<8x512xf32>
    %16 = arith.divf %14, %15 : vector<8x512xf32>
    %17 = arith.mulf %10, %16 : vector<8x512xf32>
    %18 = arith.mulf %17, %11 : vector<8x512xf32>
    %cst_13 = arith.constant dense<0.000000e+00> : vector<8x256xf32>
    %19 = tpu.matmul %18, %9, %cst_13 {dimension_numbers = #tpu.dot_dimension_numbers<[1], [1], [0], [0], [0, 0, 1, 0], [], []>} : vector<8x512xf32>, vector<256x512xf32>, vector<8x256xf32> -> vector<8x256xf32>
    %c0_14 = arith.constant 0 : index
    %c0_15 = arith.constant 0 : index
    %20 = vector.load %arg6[%c0_14, %c0_15] : memref<8x16xf32, #tpu.memory_space<vmem>>, vector<8x16xf32>
    %21 = tpu.iota {dimensions = array<i32: 1>} : vector<8x16xi32>
    %22 = vector.broadcast %arg1 : i32 to vector<8x16xi32>
    %23 = arith.cmpi eq, %21, %22 : vector<8x16xi32>
    %cst_16 = arith.constant 0.000000e+00 : f32
    %24 = vector.broadcast %cst_16 : f32 to vector<8x16xf32>
    %25 = arith.select %23, %20, %24 : vector<8x16xi1>, vector<8x16xf32>
    %cst_17 = arith.constant dense<0.000000e+00> : vector<8xf32>
    %26 = vector.multi_reduction <add>, %25, %cst_17 [1] : vector<8x16xf32> to vector<8xf32>
    %27 = vector.shape_cast %26 : vector<8xf32> to vector<8x1xf32>
    %c0_18 = arith.constant 0 : index
    %c0_19 = arith.constant 0 : index
    %28 = vector.load %arg8[%c0_18, %c0_19] : memref<8x256xf32, #tpu.memory_space<vmem>>, vector<8x256xf32>
    %29 = vector.broadcast %27 : vector<8x1xf32> to vector<8x256xf32>
    %30 = arith.mulf %29, %19 : vector<8x256xf32>
    %31 = arith.addf %28, %30 : vector<8x256xf32>
    %c0_20 = arith.constant 0 : index
    %c0_21 = arith.constant 0 : index
    %32 = vector.load %arg8[%c0_20, %c0_21] : memref<8x256xf32, #tpu.memory_space<vmem>>, vector<8x256xf32>
    tpu.vector_store %arg8[%c0_20, %c0_21], %31 {strides = array<i32>} : memref<8x256xf32, #tpu.memory_space<vmem>>, vector<8x256xf32>,
    %c15_i32 = arith.constant 15 : i32
    %33 = arith.cmpi eq, %arg1, %c15_i32 : i32
    %34 = arith.extui %33 : i1 to i32
    %c0_i32_22 = arith.constant 0 : i32
    %35 = arith.cmpi ne, %34, %c0_i32_22 : i32
    scf.if %35 {
      %c0_23 = arith.constant 0 : index
      %c0_24 = arith.constant 0 : index
      %36 = vector.load %arg8[%c0_23, %c0_24] : memref<8x256xf32, #tpu.memory_space<vmem>>, vector<8x256xf32>
      %c0_25 = arith.constant 0 : index
      %c0_26 = arith.constant 0 : index
      %37 = vector.load %arg7[%c0_25, %c0_26] : memref<8x256xf32, #tpu.memory_space<vmem>>, vector<8x256xf32>
      tpu.vector_store %arg7[%c0_25, %c0_26], %36 {strides = array<i32>} : memref<8x256xf32, #tpu.memory_space<vmem>>, vector<8x256xf32>,
    } else {
    }
    return
  }
  func.func @transform_0(%arg0: i32, %arg1: i32) -> (i32, i32) {
    %c0_i32 = arith.constant 0 : i32
    %c0_i32_0 = arith.constant 0 : i32
    return %arg0, %c0_i32 : i32, i32
  }
  func.func @transform_1(%arg0: i32, %arg1: i32) -> (i32, i32, i32) {
    %c0_i32 = arith.constant 0 : i32
    %c0_i32_0 = arith.constant 0 : i32
    %c0_i32_1 = arith.constant 0 : i32
    return %arg1, %c0_i32, %c0_i32_0 : i32, i32, i32
  }
  func.func @transform_2(%arg0: i32, %arg1: i32) -> (i32, i32, i32) {
    %c0_i32 = arith.constant 0 : i32
    %c0_i32_0 = arith.constant 0 : i32
    %c0_i32_1 = arith.constant 0 : i32
    return %arg1, %c0_i32, %c0_i32_0 : i32, i32, i32
  }
  func.func @transform_3(%arg0: i32, %arg1: i32) -> (i32, i32, i32) {
    %c0_i32 = arith.constant 0 : i32
    %c0_i32_0 = arith.constant 0 : i32
    %c0_i32_1 = arith.constant 0 : i32
    return %arg1, %c0_i32, %c0_i32_0 : i32, i32, i32
  }
  func.func @transform_4(%arg0: i32, %arg1: i32) -> (i32, i32) {
    %c0_i32 = arith.constant 0 : i32
    %c0_i32_0 = arith.constant 0 : i32
    return %arg0, %c0_i32 : i32, i32
  }
  func.func @transform_5(%arg0: i32, %arg1: i32) -> (i32, i32) {
    %c0_i32 = arith.constant 0 : i32
    %c0_i32_0 = arith.constant 0 : i32
    return %arg0, %c0_i32 : i32, i32
  }
}

</mosaic_0001>

<bundles_post_ra>
// kernel: deepseekv3_moe.2
= control target key start
LH: loop header
LB: loop body
LE: loop exit
PB: predicated region body
PF: predicated region fallthrough
CT: control target
= control target key end

     0   :  { %7 = vsyncpa [#allocation3], 0  ;;  %s230_s0 = inlined_call_operand.hbm [shape: f32[8,256], index: 0, kind: input, shape index: {}]   ;;  %s231_s1 = inlined_call_operand.hbm [shape: f32[16,256], index: 1, kind: input, shape index: {}]   ;;  %s232_s2 = inlined_call_operand.vmem [shape: f32[8,16], index: 2, kind: output, shape index: {}]  }
   0x1   :  { %8 = vsyncpa [#allocation5], 0  ;;  %s177_s9 = smov [#allocation2]   ;;  %s178_s11 = smov [#allocation4]  }
   0x2   :  { %s15_s10 = sshll.u32 %s177_s9, 4  ;;  %s24_s12 = sshll.u32 %s178_s11, 4  ;;  %s16_s10 = int_to_ptr.vmem [resolvable:$true] %s15_s10  ;;  %s196_s12 = int_to_ptr.vmem [resolvable:$true] %s24_s12 }
   0x3   :  { %s129_s15 = scalar_lea.hbm %s230_s0, 256 }
   0x4   :  { %p130_p0 = scmp.ne.s32.totalorder %s230_s0, %s129_s15  ;;  %p133_p1 = scmp.lt.u32.totalorder %s129_s15, %s230_s0 }
   0x6   :  { %p135_p2 = pnand %p133_p1, %p130_p0 }
   0x8   :  { %138 = shalt.err (!%p135_p2)
}
   0x9   :  { %s139_s20 = scalar_lea.vmem %s16_s10, 256  ;;  %p144_p4 = scmp.lt.s32.totalorder %s16_s10, %s16_s10 }
   0xa   :  { %p140_p3 = scmp.ne.s32.totalorder %s16_s10, %s139_s20  ;;  %p145_p5 = scmp.lt.s32.totalorder %s139_s20, %s139_s20 }
   0xc   :  { %p146_p6 = por %p145_p5, %p144_p4 }
   0xe   :  { %p147_p7 = pnand %p146_p6, %p140_p3 }
  0x10   :  { %150 = shalt.err (!%p147_p7)
}
  0x11   :  { %18 = dma.hbm_to_vmem [thread:$0]  %s230_s0, 256, %s16_s10, [#allocation3]  }
  0x12   :  { %s151_s25 = scalar_lea.hbm %s231_s1, 512 }
  0x13   :  { %p152_p8 = scmp.ne.s32.totalorder %s231_s1, %s151_s25  ;;  %p155_p9 = scmp.lt.u32.totalorder %s151_s25, %s231_s1 }
  0x15   :  { %p157_p10 = pnand %p155_p9, %p152_p8 }
  0x17   :  { %160 = shalt.err (!%p157_p10)
}
  0x18   :  { %s161_s30 = scalar_lea.vmem %s196_s12, 512  ;;  %p166_p12 = scmp.lt.s32.totalorder %s196_s12, %s196_s12 }
  0x19   :  { %p162_p11 = scmp.ne.s32.totalorder %s196_s12, %s161_s30  ;;  %p167_p13 = scmp.lt.s32.totalorder %s161_s30, %s161_s30 }
  0x1b   :  { %p168_p0 = por %p167_p13, %p166_p12 }
  0x1d   :  { %p169_p1 = pnand %p168_p0, %p162_p11 }
  0x1f   :  { %172 = shalt.err (!%p169_p1)
}
  0x20   :  { %s179_s0 = smov 256   ;;  %s180_s3 = smov 16  }
  0x21   :  { %30 = dma.hbm_to_vmem [thread:$0]  %s231_s1, 512, %s196_s12, [#allocation5], %s179_s0, %s179_s0, %s180_s3  }
  0x22   :  { %173 = dma.done.wait [#allocation3], 256  }
  0x23   :  { %174 = vsyncadd [#allocation3], 4294967040 }
  0x24   :  { %175 = dma.done.wait [#allocation5], 512  }
  0x25   :  { %176 = vsyncadd [#allocation5], 4294966784  ;;  %v40_v0 = vld [vmem:[#allocation4 + $0x8] sm:$0xff]  ;;  %v42_v1 = vld [vmem:[#allocation4 + $0x18] sm:$0xff]  ;;  %vm113_vm0 = vcmask 130048  }
  0x26   :  { %v39_v2 = vld [vmem:[#allocation4] sm:$0xff]  ;;  %v121_v3 = vpack.c.bf16 %v42_v1, %v40_v0  ;;  %v41_v4 = vld [vmem:[#allocation4 + $0x10] sm:$0xff]  ;;  %v38_v5 = vld [vmem:[#allocation2 + $0x8] sm:$0xff] }
  0x27   :  { %v123_v6 = vpack.c.bf16 %v41_v4, %v39_v2  ;;  %107 = vmatprep.mubr.f32.mxu0 %v38_v5  ;;  %v37_v7 = vld [vmem:[#allocation2] sm:$0xff] }
  0x28   :  { %122 = vmatprep.subr.bf16.mxu0 %v121_v3 }
  0x29   :  { %124 = vmatpush1.bf16.xpose.msra.mxu0 %v123_v6 }
  0x30   :  { %108 = vmatmul.mubr.f32.vlgmr.msra.gmra.mrb[0].mxu0 %v37_v7 }
 0x103   :  { %v109_v8 = vpop.f32.mrb[0].mxu0 }
 0x104   :  { %114 = vst.msk [vmem:[%s232_s2] sm:$0xff] %vm113_vm0, %v109_v8  ;;  %v111_v9 = vpop.f32.mrb[1].mxu0 }
 0x105   :  { %119 = vsyncpa [#allocation3], 1 }
 0x106   :  { %120 = vsyncpa [#allocation5], 1 }

// kernel: deepseekv3_moe.3
= control target key start
LH: loop header
LB: loop body
LE: loop exit
PB: predicated region body
PF: predicated region fallthrough
CT: control target
= control target key end

     0   :  { %s2833_s0 = inlined_call_operand.hbm [shape: f32[8,256], index: 0, kind: input, shape index: {}]   ;;  %s2834_s1 = inlined_call_operand.hbm [shape: f32[16,512,256], index: 1, kind: input, shape index: {}]   ;;  %s2835_s2 = inlined_call_operand.hbm [shape: f32[16,512,256], index: 2, kind: input, shape index: {}]   ;;  %s2836_s3 = inlined_call_operand.hbm [shape: f32[16,256,512], index: 3, kind: input, shape index: {}]   ;;  %s2837_s4 = inlined_call_operand.vmem [shape: f32[8,16], index: 4, kind: input, shape index: {}]   ;;  %s2838_s5 = inlined_call_operand.hbm [shape: f32[8,256], index: 5, kind: output, shape index: {}]  }
   0x1   :  { %2850 = sst [smem:[#allocation17_spill]] %s2834_s1 }
   0x2   :  { %2851 = sst [smem:[#allocation18_spill]] %s2835_s2 }
   0x3   :  { %10 = vsyncpa [#allocation4], 0 }
   0x4   :  { %11 = vsyncpa [#allocation7], 0 }
   0x5   :  { %13 = vsyncpa [#allocation7 + $0x1], 0 }
   0x6   :  { %14 = vsyncpa [#allocation10], 0 }
   0x7   :  { %16 = vsyncpa [#allocation10 + $0x1], 0 }
   0x8   :  { %17 = vsyncpa [#allocation5], 0  ;;  %s2152_s18 = smov 0   ;;  %s2154_s19 = smov 0  }
   0x9   :  { %s2156_s20 = smov 0   ;;  %s2158_s21 = smov 0  }
   0xa   :  { %s2160_s22 = smov 0   ;;  %s2162_s23 = smov 0  }
   0xb LB: > { %s32_s24 = sadd.s32 1, %s2106_s22  ;;  %s68_s25 = sadd.s32 1, %s2098_s20  ;;  %s2110_s23 = sphi %s2162_s23, %s23_s23   ;;  %s2106_s22 = sphi %s2160_s22, %s2875_s22   ;;  %s2102_s21 = sphi %s2158_s21, %s2874_s21   ;;  %s2098_s20 = sphi %s2156_s20, %s2873_s20   ;;  %s2094_s19 = sphi %s2154_s19, %s2872_s19   ;;  %s2090_s18 = sphi %s2152_s18, %s2871_s18  }
   0xc   : > { %p33_p0 = scmp.ge.s32.totalorder %s32_s24, 16  ;;  %p75_p1 = scmp.ne.s32.totalorder %s2098_s20, %s2094_s19 }
   0xd   : > { %p76_p2 = scmp.eq.s32.totalorder %s2110_s23, 0  ;;  %p1829_p4 = scmp.lt.s32.totalorder %s2110_s23, 16 }
   0xe   : > { %s2877_s24 = smov (%p33_p0, %s32_s24), 0  ;;  %s230_s27 = sand.u32 1, %s2110_s23  }
   0xf   : > { %2852 = sst [smem:[#allocation16_spill]] %s2877_s24  ;;  %p77_p3 = por %p76_p2, %p75_p1 }
  0x10   : > { %s65_s26 = ssub.s32 %s2106_s22, %s2877_s24  ;;  %s2839_s28 = sand.u32 1, %s2098_s20  }
  0x11   : > { %p66_p5 = scmp.eq.s32.totalorder %s65_s26, 0  ;;  %s2195_s29 = sshll.u32 %s2106_s22, 14 }
  0x12   : > { %s2202_s6 = sshll.u32 %s2839_s28, 10  ;;  %s2853_s1 = sld [smem:[#allocation17_spill]] }
  0x13   : > { %s2198_s30 = scalar_select %p66_p5, %s2098_s20, %s68_s25  }
  0x14   : > { %p2210_p6 = pnand %p1829_p4, %p77_p3  ;;  %s234_s11 = scalar_lea.vmem [#allocation6], %s2202_s6 }
  0x15   : > { %s241_s12 = sshll.u32 %s234_s11, 4  ;;  %s2217_s13 = scalar_lea.sflag [#allocation7], %s230_s27  ;;  %s2215_s12 = int_to_ptr.vmem [resolvable:$true] %s241_s12 }
  0x16   : > { %s2854_s10 = scalar_select %p2210_p6, 1, 0 }
  0x17   : > { %p2223_p8 = pneg %p2210_p6 }
  0x18   : > { %s2208_s9 = scalar_lea.hbm %s2853_s1, %s2195_s29  ;;  %s1909_s25 = scalar_lea.hbm %s2853_s1, 262144 }
  0x19   : > { %s1904_s14 = scalar_lea.hbm %s2208_s9, 16384  ;;  %p1910_p11 = scmp.lt.u32.totalorder %s2208_s9, %s2853_s1 }
  0x1a   : > { %p1905_p7 = scmp.ne.s32.totalorder %s2208_s9, %s1904_s14  ;;  %p1911_p12 = scmp.lt.u32.totalorder %s1909_s25, %s1904_s14 }
  0x1b   : > { %s2855_s15 = scalar_select %p2223_p8, 1, 0 }
  0x1c   : > { %p1907_p9 = pnand %p2223_p8, %p1905_p7  ;;  %p1912_p13 = por %p1911_p12, %p1910_p11 }
  0x1d   : > { %p1913_p0 = scmp.lt.u32.totalorder %s1904_s14, %s2208_s9 }
  0x1e   : > { %p1908_p10 = pneg %p1907_p9 }
  0x1f   : > { %p1914_p1 = por %p1913_p0, %p1912_p13 }
  0x21   : > { %p1915_p2 = pnand %p1914_p1, %p1908_p10 }
  0x23   : > { %1918 = shalt.err (!%p1915_p2)
}
  0x24   : > { %s1919_s27 = scalar_lea.vmem %s2215_s12, 16384  ;;  %s2112_s8 = smov [#allocation6]  }
  0x25   : > { %p1920_p3 = scmp.ne.s32.totalorder %s2215_s12, %s1919_s27  ;;  %s1924_s11 = sshll.u32 %s2112_s8, 4  ;;  %s1925_s11 = int_to_ptr.vmem [resolvable:$false] %s1924_s11 }
  0x26   : > { %s1926_s16 = scalar_lea.vmem %s1925_s11, 32768  ;;  %p1927_p7 = scmp.lt.s32.totalorder %s2215_s12, %s1925_s11 }
  0x27   : > { %p1922_p4 = pnand %p1920_p3, %p2223_p8  ;;  %p1928_p9 = scmp.lt.s32.totalorder %s1926_s16, %s1919_s27 }
  0x29   : > { %p1923_p5 = pneg %p1922_p4  ;;  %p1929_p11 = por %p1928_p9, %p1927_p7 }
  0x2b   : > { %p1930_p12 = pnand %p1929_p11, %p1923_p5 }
  0x2d   : > { %1933 = shalt.err (!%p1930_p12)
}
  0x2e   : > { %s2840_s14 = smov 256   ;;  %s2841_s17 = smov 16  }
  0x2f   : > { %1821 = dma.hbm_to_vmem [thread:$0]  (!%p2210_p6), %s2208_s9, 16384, %s2215_s12, %s2217_s13, %s2840_s14, %s2840_s14, %s2841_s17  }
  0x30   : > { %s2251_s25 = sadd.s32 4294967295, %s2110_s23   ;;  %p81_p10 = scmp.ne.s32.totalorder %s2094_s19, %s2090_s18 }
  0x31   : > { %p2842_p13 = scmp.eq.s32.totalorder %s2251_s25, 0  ;;  %p1383_p0 = scmp.ge.s32.totalorder %s2110_s23, 1 }
  0x32   : > { %p196_p1 = scmp.lt.s32.totalorder %s2110_s23, 17  ;;  %s2115_s9 = smov [#allocation3]  }
  0x33   : > { %p2260_p2 = por %p2842_p13, %p81_p10  ;;  %s212_s12 = sshll.u32 %s2115_s9, 4  ;;  %s2270_s12 = int_to_ptr.vmem [resolvable:$true] %s212_s12 }
  0x34   : > { %p2264_p3 = pnand %p1383_p0, %p196_p1  ;;  %s2858_s2 = sld [smem:[#allocation18_spill]] }
  0x35   : > { %s2856_s26 = scalar_select %p2260_p2, 1, 0 }
  0x36   : > { %s2857_s7 = scalar_select %p2264_p3, 1, 0 }
  0x37   : > { %p1814_p4 = pneg %p2264_p3  ;;  %s255_s11 = scalar_lea.vmem [#allocation8], %s2202_s6 }
  0x38   : > { %s262_s16 = sshll.u32 %s255_s11, 4  ;;  %s2285_s16 = int_to_ptr.vmem [resolvable:$true] %s262_s16 }
  0x39   : > { %p2281_p5 = pnand %p1814_p4, %p2842_p13 }
  0x3a   : > { %s2276_s8 = scalar_lea.hbm %s2858_s2, %s2195_s29  ;;  %s1939_s14 = scalar_lea.hbm %s2858_s2, 262144 }
  0x3b   : > { %s2859_s28 = scalar_select %p2281_p5, 1, 0 }
  0x3c   : > { %s1934_s9 = scalar_lea.hbm %s2276_s8, 16384  ;;  %p1940_p12 = scmp.lt.u32.totalorder %s2276_s8, %s2858_s2 }
  0x3d   : > { %p1935_p7 = scmp.ne.s32.totalorder %s2276_s8, %s1934_s9  ;;  %p1941_p10 = scmp.lt.u32.totalorder %s1939_s14, %s1934_s9 }
  0x3e   : > { %p1943_p1 = scmp.lt.u32.totalorder %s1934_s9, %s2276_s8 }
  0x3f   : > { %p1937_p9 = pnand %p1935_p7, %p2223_p8  ;;  %p1942_p0 = por %p1941_p10, %p1940_p12 }
  0x41   : > { %p1938_p11 = pneg %p1937_p9  ;;  %p1944_p4 = por %p1943_p1, %p1942_p0 }
  0x43   : > { %p1945_p13 = pnand %p1944_p4, %p1938_p11 }
  0x45   : > { %1948 = shalt.err (!%p1945_p13)
}
  0x46   : > { %s1949_s11 = scalar_lea.vmem %s2285_s16, 16384  ;;  %s2116_s18 = smov [#allocation8]  }
  0x47   : > { %p1950_p7 = scmp.ne.s32.totalorder %s2285_s16, %s1949_s11  ;;  %s1954_s27 = sshll.u32 %s2116_s18, 4  ;;  %s1955_s27 = int_to_ptr.vmem [resolvable:$false] %s1954_s27 }
  0x48   : > { %s1956_s1 = scalar_lea.vmem %s1955_s27, 32768  ;;  %p1957_p3 = scmp.lt.s32.totalorder %s2285_s16, %s1955_s27 }
  0x49   : > { %p1952_p9 = pnand %p1950_p7, %p2223_p8  ;;  %p1958_p5 = scmp.lt.s32.totalorder %s1956_s1, %s1949_s11 }
  0x4b   : > { %p1953_p2 = pneg %p1952_p9  ;;  %p1959_p12 = por %p1958_p5, %p1957_p3 }
  0x4d   : > { %p1960_p10 = pnand %p1959_p12, %p1953_p2 }
  0x4f   : > { %1963 = shalt.err (!%p1960_p10)
}
  0x50   : > { %s2860_s14 = smov 16   ;;  %s2861_s17 = smov 256  }
  0x51   : > { %1824 = dma.hbm_to_vmem [thread:$0]  (!%p2210_p6), %s2276_s8, 16384, %s2285_s16, %s2217_s13, %s2861_s17, %s2861_s17, %s2860_s14  }
  0x52   : > { %s1964_s18 = scalar_lea.hbm %s2833_s0, 256  ;;  %p2862_p2 = scmp.ne.s32.totalorder %s2859_s28, 0 }
  0x53   : > { %p1965_p13 = scmp.ne.s32.totalorder %s2833_s0, %s1964_s18  ;;  %p1971_p0 = scmp.lt.u32.totalorder %s1964_s18, %s2833_s0 }
  0x54   : > { %p1966_p3 = pneg %p2862_p2 }
  0x56   : > { %p1967_p5 = pnand %p1966_p3, %p1965_p13 }
  0x58   : > { %p1968_p11 = pneg %p1967_p5 }
  0x5a   : > { %p1973_p1 = pnand %p1971_p0, %p1968_p11 }
  0x5c   : > { %1976 = shalt.err (!%p1973_p1)
}
  0x5d   : > { %s1977_s13 = scalar_lea.vmem %s2270_s12, 256  ;;  %p1985_p12 = scmp.lt.s32.totalorder %s2270_s12, %s2270_s12 }
  0x5e   : > { %p1978_p4 = scmp.ne.s32.totalorder %s2270_s12, %s1977_s13  ;;  %p1986_p10 = scmp.lt.s32.totalorder %s1977_s13, %s1977_s13 }
  0x60   : > { %p1980_p7 = pnand %p1978_p4, %p1966_p3  ;;  %p1987_p6 = por %p1986_p10, %p1985_p12 }
  0x62   : > { %p1981_p9 = pneg %p1980_p7 }
  0x64   : > { %p1988_p8 = pnand %p1987_p6, %p1981_p9 }
  0x66   : > { %1991 = shalt.err (!%p1988_p8)
}
  0x67   : > { %1817 = dma.hbm_to_vmem [thread:$0]  (!%p2862_p2), %s2833_s0, 256, %s2270_s12, [#allocation4]  }
  0x68   : > { %s2337_s14 = scalar_lea.hbm %s2836_s3, %s2195_s29  ;;  %s276_s17 = scalar_lea.vmem [#allocation9], %s2202_s6 }
  0x69   : > { %s283_s28 = sshll.u32 %s276_s17, 4  ;;  %s2863_s9 = sand.u32 1, %s2098_s20   ;;  %s2340_s28 = int_to_ptr.vmem [resolvable:$true] %s283_s28 }
  0x6a   : > { %s2344_s18 = scalar_lea.sflag [#allocation10], %s2863_s9  ;;  %s1992_s27 = scalar_lea.hbm %s2337_s14, 16384 }
  0x6b   : > { %p1993_p6 = scmp.ne.s32.totalorder %s2337_s14, %s1992_s27  ;;  %p2864_p8 = scmp.ne.s32.totalorder %s2855_s15, 0 }
  0x6c   : > { %s1997_s29 = scalar_lea.hbm %s2836_s3, 262144  ;;  %p1998_p3 = scmp.lt.u32.totalorder %s2337_s14, %s2836_s3 }
  0x6d   : > { %p1995_p13 = pnand %p1993_p6, %p2864_p8  ;;  %p1999_p5 = scmp.lt.u32.totalorder %s1997_s29, %s1992_s27 }
  0x6e   : > { %p2001_p0 = scmp.lt.u32.totalorder %s1992_s27, %s2337_s14 }
  0x6f   : > { %p1996_p2 = pneg %p1995_p13  ;;  %p2000_p11 = por %p1999_p5, %p1998_p3 }
  0x71   : > { %p2002_p1 = por %p2001_p0, %p2000_p11 }
  0x73   : > { %p2003_p4 = pnand %p2002_p1, %p1996_p2 }
  0x75   : > { %2006 = shalt.err (!%p2003_p4)
}
  0x76   : > { %s2007_s6 = scalar_lea.vmem %s2340_s28, 16384  ;;  %s2117_s2 = smov [#allocation9]  }
  0x77   : > { %p2008_p7 = scmp.ne.s32.totalorder %s2340_s28, %s2007_s6  ;;  %s2012_s24 = sshll.u32 %s2117_s2, 4  ;;  %s2013_s24 = int_to_ptr.vmem [resolvable:$false] %s2012_s24 }
  0x78   : > { %s2014_s8 = scalar_lea.vmem %s2013_s24, 32768  ;;  %p2015_p10 = scmp.lt.s32.totalorder %s2340_s28, %s2013_s24 }
  0x79   : > { %p2010_p9 = pnand %p2008_p7, %p2864_p8  ;;  %p2016_p6 = scmp.lt.s32.totalorder %s2014_s8, %s2007_s6 }
  0x7b   : > { %p2011_p12 = pneg %p2010_p9  ;;  %p2017_p13 = por %p2016_p6, %p2015_p10 }
  0x7d   : > { %p2018_p3 = pnand %p2017_p13, %p2011_p12 }
  0x7f   : > { %2021 = shalt.err (!%p2018_p3)
}
  0x80   : > { %s2118_s16 = smov 512   ;;  %s2119_s17 = smov 32  }
  0x81   : > { %p2865_p2 = scmp.ne.s32.totalorder %s2854_s10, 0  ;;  %p2866_p8 = scmp.ne.s32.totalorder %s2857_s7, 0 }
  0x82   : > { %p2867_p5 = scmp.eq.s32.totalorder (!%p2866_p8), %s2251_s25, 0 }
  0x83   : > { %1827 = dma.hbm_to_vmem [thread:$0]  (!%p2865_p2), %s2337_s14, 16384, %s2340_s28, %s2344_s18, %s2118_s16, %s2118_s16, %s2119_s17  }
  0x84   : > { %295 = sbr.rel (%p2866_p8) target bundleno = 1011 (0x3f3), region = 40 }
  0x8b   : > { %2073 = dma.done.wait (%p2867_p5), [#allocation4], 256   ;;  %p2868_p11 = pmov %p2867_p5 }
  0x8c   : > { %s301_s15 = sand.u32 1, %s2251_s25   ;;  %s303_s9 = sand.u32 1, %s2094_s19  }
  0x8d   : > { %2075 = vsyncadd (%p2868_p11), [#allocation4], 4294967040  ;;  %s1398_s27 = sshll.u32 %s303_s9, 10  ;;  %s302_s12 = scalar_lea.sflag [#allocation7], %s301_s15 }
  0x8e   : > { %s2376_s11 = scalar_lea.vmem [#allocation6], %s1398_s27  ;;  %p2869_p0 = scmp.ne.s32.totalorder %s2856_s26, 0 }
  0x90   : > { %2077 = dma.done.wait (%p2869_p0), %s302_s12, 32768  }
  0x91   : > { %2079 = vsyncadd (%p2869_p0), %s302_s12, 4294934528  ;;  %s2382_s10 = scalar_lea.vmem [#allocation8], %s1398_s27  ;;  %s320_s7 = scalar_lea.sflag [#allocation10], %s303_s9 }
  0x92   : > { %s2384_s14 = scalar_lea.vmem [#allocation9], %s1398_s27 }
  0x93   : > { %2081 = dma.done.wait (%p2869_p0), %s320_s7, 16384  }
  0x94   : > { %2083 = vsyncadd (%p2869_p0), %s320_s7, 4294950912  ;;  %p1401_p1 = scmp.ne.s32.totalorder %s2102_s21, 0 }
  0x95   : > { %v2120_v0 = vmov (!%p1401_p1), 0.0  }
  0x96   : > { %366 = sbr.rel (%p1401_p1) target bundleno = 157 (0x9d), region = 60  ;;  %367 = vst [vmem:[#allocation2] sm:$0xff] (!%p1401_p1), %v2120_v0  ;;  %368 = vst [vmem:[#allocation2 + $0x8] sm:$0xff] (!%p1401_p1), %v2120_v0 }
  0x9d PF: > { %v372_v1 = vld [vmem:[%s2376_s11 + $0x8] sm:$0xff]  ;;  %v374_v2 = vld [vmem:[%s2376_s11 + $0x18] sm:$0xff]  ;;  %v371_v3 = vld [vmem:[%s2376_s11] sm:$0xff]  ;;  %vm1219_vm0 = vcmask 130048   ;;  %p1406_p4 = scmp.ne.s32.totalorder %s2102_s21, 15 }
  0x9e   : > { %v1414_v4 = vpack.c.bf16 %v374_v2, %v372_v1  ;;  %v373_v5 = vld [vmem:[%s2376_s11 + $0x10] sm:$0xff]  ;;  %v376_v6 = vld [vmem:[%s2376_s11 + $0x28] sm:$0xff]  ;;  %v378_v7 = vld [vmem:[%s2376_s11 + $0x38] sm:$0xff] }
  0x9f   : > { %v1416_v8 = vpack.c.bf16 %v373_v5, %v371_v3  ;;  %v1418_v9 = vpack.c.bf16 %v378_v7, %v376_v6  ;;  %v375_v10 = vld [vmem:[%s2376_s11 + $0x20] sm:$0xff]  ;;  %v377_v11 = vld [vmem:[%s2376_s11 + $0x30] sm:$0xff]  ;;  %v380_v12 = vld [vmem:[%s2376_s11 + $0x48] sm:$0xff] }
  0xa0   : > { %1415 = vmatprep.subr.bf16.mxu1 %v1414_v4  ;;  %v500_v13 = vld [vmem:[%s2382_s10 + $0x8] sm:$0xff]  ;;  %v502_v14 = vld [vmem:[%s2382_s10 + $0x18] sm:$0xff]  ;;  %v499_v17 = vld [vmem:[%s2382_s10] sm:$0xff]  ;;  %v1420_v20 = vpack.c.bf16 %v377_v11, %v375_v10 }
  0xa1   : > { %1417 = vmatpush1.bf16.xpose.msra.mxu1 %v1416_v8  ;;  %v382_v15 = vld [vmem:[%s2376_s11 + $0x58] sm:$0xff]  ;;  %v1542_v16 = vpack.c.bf16 %v502_v14, %v500_v13  ;;  %v501_v18 = vld [vmem:[%s2382_s10 + $0x10] sm:$0xff]  ;;  %v504_v21 = vld [vmem:[%s2382_s10 + $0x28] sm:$0xff] }
  0xa2   : > { %1419 = vmatprep.subr.bf16.mxu1 %v1418_v9  ;;  %v1544_v19 = vpack.c.bf16 %v501_v18, %v499_v17  ;;  %v506_v22 = vld [vmem:[%s2382_s10 + $0x38] sm:$0xff]  ;;  %v1422_v23 = vpack.c.bf16 %v382_v15, %v380_v12  ;;  %v503_v25 = vld [vmem:[%s2382_s10 + $0x20] sm:$0xff]  ;;  %v505_v26 = vld [vmem:[%s2382_s10 + $0x30] sm:$0xff] }
  0xa3   : > { %1543 = vmatprep.subr.bf16.mxu0 %v1542_v16  ;;  %v1546_v24 = vpack.c.bf16 %v506_v22, %v504_v21  ;;  %v508_v27 = vld [vmem:[%s2382_s10 + $0x48] sm:$0xff]  ;;  %v510_v28 = vld [vmem:[%s2382_s10 + $0x58] sm:$0xff]  ;;  %v379_v29 = vld [vmem:[%s2376_s11 + $0x40] sm:$0xff]  ;;  %v1548_v31 = vpack.c.bf16 %v505_v26, %v503_v25 }
  0xa4   : > { %1545 = vmatpush1.bf16.xpose.msra.mxu0 %v1544_v19  ;;  %v381_v30 = vld [vmem:[%s2376_s11 + $0x50] sm:$0xff]  ;;  %v384_v32 = vld [vmem:[%s2376_s11 + $0x68] sm:$0xff]  ;;  %v386_v33 = vld [vmem:[%s2376_s11 + $0x78] sm:$0xff]  ;;  %v1550_v34 = vpack.c.bf16 %v510_v28, %v508_v27 }
  0xa5   : > { %1547 = vmatprep.subr.bf16.mxu0 %v1546_v24  ;;  %v1424_v35 = vpack.c.bf16 %v381_v30, %v379_v29  ;;  %v1426_v36 = vpack.c.bf16 %v386_v33, %v384_v32  ;;  %v507_v37 = vld [vmem:[%s2382_s10 + $0x40] sm:$0xff]  ;;  %v509_v38 = vld [vmem:[%s2382_s10 + $0x50] sm:$0xff]  ;;  %v512_v39 = vld [vmem:[%s2382_s10 + $0x68] sm:$0xff] }
  0xa6   : > { %v514_v40 = vld [vmem:[%s2382_s10 + $0x78] sm:$0xff]  ;;  %v383_v41 = vld [vmem:[%s2376_s11 + $0x60] sm:$0xff]  ;;  %v385_v42 = vld [vmem:[%s2376_s11 + $0x70] sm:$0xff]  ;;  %v1552_v43 = vpack.c.bf16 %v509_v38, %v507_v37 }
  0xa7   : > { %v388_v44 = vld [vmem:[%s2376_s11 + $0x88] sm:$0xff]  ;;  %v390_v45 = vld [vmem:[%s2376_s11 + $0x98] sm:$0xff]  ;;  %v1554_v46 = vpack.c.bf16 %v514_v40, %v512_v39  ;;  %v1428_v47 = vpack.c.bf16 %v385_v42, %v383_v41  ;;  %v511_v49 = vld [vmem:[%s2382_s10 + $0x60] sm:$0xff] }
  0xa8   : > { %v1430_v48 = vpack.c.bf16 %v390_v45, %v388_v44  ;;  %v513_v50 = vld [vmem:[%s2382_s10 + $0x70] sm:$0xff]  ;;  %v516_v51 = vld [vmem:[%s2382_s10 + $0x88] sm:$0xff]  ;;  %v518_v52 = vld [vmem:[%s2382_s10 + $0x98] sm:$0xff] }
  0xa9   : > { %1421 = vmatpush1.bf16.xpose.msra.mxu1 %v1420_v20  ;;  %v387_v53 = vld [vmem:[%s2376_s11 + $0x80] sm:$0xff]  ;;  %v389_v54 = vld [vmem:[%s2376_s11 + $0x90] sm:$0xff]  ;;  %v1556_v55 = vpack.c.bf16 %v513_v50, %v511_v49  ;;  %v392_v56 = vld [vmem:[%s2376_s11 + $0xa8] sm:$0xff]  ;;  %v1558_v58 = vpack.c.bf16 %v518_v52, %v516_v51 }
  0xaa   : > { %1423 = vmatprep.subr.bf16.mxu1 %v1422_v23  ;;  %v394_v57 = vld [vmem:[%s2376_s11 + $0xb8] sm:$0xff]  ;;  %v1432_v59 = vpack.c.bf16 %v389_v54, %v387_v53  ;;  %v515_v61 = vld [vmem:[%s2382_s10 + $0x80] sm:$0xff]  ;;  %v517_v62 = vld [vmem:[%s2382_s10 + $0x90] sm:$0xff] }
  0xab   : > { %v1434_v60 = vpack.c.bf16 %v394_v57, %v392_v56  ;;  %v520_v63 = vld [vmem:[%s2382_s10 + $0xa8] sm:$0xff]  ;;  %v522_v0 = vld [vmem:[%s2382_s10 + $0xb8] sm:$0xff]  ;;  %v391_v1 = vld [vmem:[%s2376_s11 + $0xa0] sm:$0xff]  ;;  %v1560_v3 = vpack.c.bf16 %v517_v62, %v515_v61 }
  0xac   : > { %1549 = vmatpush1.bf16.xpose.msra.mxu0 %v1548_v31  ;;  %v393_v2 = vld [vmem:[%s2376_s11 + $0xb0] sm:$0xff]  ;;  %v396_v4 = vld [vmem:[%s2376_s11 + $0xc8] sm:$0xff]  ;;  %v398_v5 = vld [vmem:[%s2376_s11 + $0xd8] sm:$0xff]  ;;  %v1562_v6 = vpack.c.bf16 %v522_v0, %v520_v63 }
  0xad   : > { %1551 = vmatprep.subr.bf16.mxu0 %v1550_v34  ;;  %v2439_v7 = vld [vmem:[#allocation3 + $0x8] sm:$0xff]  ;;  %v1436_v8 = vpack.c.bf16 %v393_v2, %v391_v1  ;;  %v1438_v9 = vpack.c.bf16 %v398_v5, %v396_v4  ;;  %v519_v10 = vld [vmem:[%s2382_s10 + $0xa0] sm:$0xff]  ;;  %v521_v11 = vld [vmem:[%s2382_s10 + $0xb0] sm:$0xff] }
  0xae   : > { %819 = vmatprep.mubr.f32.mxu1 %v2439_v7  ;;  %961 = vmatprep.mubr.f32.mxu0 %v2439_v7  ;;  %v524_v12 = vld [vmem:[%s2382_s10 + $0xc8] sm:$0xff]  ;;  %v526_v13 = vld [vmem:[%s2382_s10 + $0xd8] sm:$0xff]  ;;  %v395_v14 = vld [vmem:[%s2376_s11 + $0xc0] sm:$0xff]  ;;  %v1564_v16 = vpack.c.bf16 %v521_v11, %v519_v10 }
  0xaf   : > { %v397_v15 = vld [vmem:[%s2376_s11 + $0xd0] sm:$0xff]  ;;  %v400_v17 = vld [vmem:[%s2376_s11 + $0xe8] sm:$0xff]  ;;  %v402_v18 = vld [vmem:[%s2376_s11 + $0xf8] sm:$0xff]  ;;  %v1566_v19 = vpack.c.bf16 %v526_v13, %v524_v12 }
  0xb0   : > { %v1440_v20 = vpack.c.bf16 %v397_v15, %v395_v14  ;;  %v1442_v21 = vpack.c.bf16 %v402_v18, %v400_v17  ;;  %v523_v22 = vld [vmem:[%s2382_s10 + $0xc0] sm:$0xff]  ;;  %v525_v23 = vld [vmem:[%s2382_s10 + $0xd0] sm:$0xff]  ;;  %v528_v24 = vld [vmem:[%s2382_s10 + $0xe8] sm:$0xff] }
  0xb1   : > { %1425 = vmatpush1.bf16.xpose.msra.mxu1 %v1424_v35  ;;  %v530_v25 = vld [vmem:[%s2382_s10 + $0xf8] sm:$0xff]  ;;  %v399_v26 = vld [vmem:[%s2376_s11 + $0xe0] sm:$0xff]  ;;  %v401_v27 = vld [vmem:[%s2376_s11 + $0xf0] sm:$0xff]  ;;  %v1568_v28 = vpack.c.bf16 %v525_v23, %v523_v22 }
  0xb2   : > { %1427 = vmatprep.subr.bf16.mxu1 %v1426_v36  ;;  %v404_v29 = vld [vmem:[%s2376_s11 + $0x108] sm:$0xff]  ;;  %v406_v30 = vld [vmem:[%s2376_s11 + $0x118] sm:$0xff]  ;;  %v1570_v31 = vpack.c.bf16 %v530_v25, %v528_v24  ;;  %v1444_v32 = vpack.c.bf16 %v401_v27, %v399_v26  ;;  %v527_v34 = vld [vmem:[%s2382_s10 + $0xe0] sm:$0xff] }
  0xb3   : > { %v1446_v33 = vpack.c.bf16 %v406_v30, %v404_v29  ;;  %v529_v35 = vld [vmem:[%s2382_s10 + $0xf0] sm:$0xff]  ;;  %v532_v36 = vld [vmem:[%s2382_s10 + $0x108] sm:$0xff]  ;;  %v534_v37 = vld [vmem:[%s2382_s10 + $0x118] sm:$0xff] }
  0xb4   : > { %1553 = vmatpush1.bf16.xpose.msra.mxu0 %v1552_v43  ;;  %v403_v38 = vld [vmem:[%s2376_s11 + $0x100] sm:$0xff]  ;;  %v405_v39 = vld [vmem:[%s2376_s11 + $0x110] sm:$0xff]  ;;  %v1572_v40 = vpack.c.bf16 %v529_v35, %v527_v34  ;;  %v408_v41 = vld [vmem:[%s2376_s11 + $0x128] sm:$0xff]  ;;  %v1574_v43 = vpack.c.bf16 %v534_v37, %v532_v36 }
  0xb5   : > { %1555 = vmatprep.subr.bf16.mxu0 %v1554_v46  ;;  %v410_v42 = vld [vmem:[%s2376_s11 + $0x138] sm:$0xff]  ;;  %v1448_v44 = vpack.c.bf16 %v405_v39, %v403_v38  ;;  %v531_v46 = vld [vmem:[%s2382_s10 + $0x100] sm:$0xff]  ;;  %v409_v51 = vld [vmem:[%s2376_s11 + $0x130] sm:$0xff] }
  0xb6   : > { %v1450_v45 = vpack.c.bf16 %v410_v42, %v408_v41  ;;  %v538_v49 = vld [vmem:[%s2382_s10 + $0x138] sm:$0xff]  ;;  %v407_v50 = vld [vmem:[%s2376_s11 + $0x120] sm:$0xff]  ;;  %v412_v53 = vld [vmem:[%s2376_s11 + $0x148] sm:$0xff] }
  0xb7   : > { %v414_v54 = vld [vmem:[%s2376_s11 + $0x158] sm:$0xff]  ;;  %v1452_v56 = vpack.c.bf16 %v409_v51, %v407_v50  ;;  %v411_v62 = vld [vmem:[%s2376_s11 + $0x140] sm:$0xff]  ;;  %v413_v63 = vld [vmem:[%s2376_s11 + $0x150] sm:$0xff] }
  0xb8   : > { %v1454_v57 = vpack.c.bf16 %v414_v54, %v412_v53  ;;  %v542_v61 = vld [vmem:[%s2382_s10 + $0x158] sm:$0xff]  ;;  %v416_v1 = vld [vmem:[%s2376_s11 + $0x168] sm:$0xff]  ;;  %v1456_v4 = vpack.c.bf16 %v413_v63, %v411_v62  ;;  %v415_v11 = vld [vmem:[%s2376_s11 + $0x160] sm:$0xff] }
  0xb9   : > { %1429 = vmatpush1.bf16.xpose.msra.mxu1 %v1428_v47  ;;  %v533_v47 = vld [vmem:[%s2382_s10 + $0x110] sm:$0xff]  ;;  %v418_v2 = vld [vmem:[%s2376_s11 + $0x178] sm:$0xff]  ;;  %v420_v14 = vld [vmem:[%s2376_s11 + $0x188] sm:$0xff] }
  0xba   : > { %1431 = vmatprep.subr.bf16.mxu1 %v1430_v48  ;;  %v536_v48 = vld [vmem:[%s2382_s10 + $0x128] sm:$0xff]  ;;  %v1576_v52 = vpack.c.bf16 %v533_v47, %v531_v46  ;;  %v1458_v5 = vpack.c.bf16 %v418_v2, %v416_v1  ;;  %v546_v10 = vld [vmem:[%s2382_s10 + $0x178] sm:$0xff]  ;;  %v417_v12 = vld [vmem:[%s2376_s11 + $0x170] sm:$0xff] }
  0xbb   : > { %v422_v15 = vld [vmem:[%s2376_s11 + $0x198] sm:$0xff]  ;;  %v1460_v17 = vpack.c.bf16 %v417_v12, %v415_v11  ;;  %v419_v23 = vld [vmem:[%s2376_s11 + $0x180] sm:$0xff]  ;;  %v421_v24 = vld [vmem:[%s2376_s11 + $0x190] sm:$0xff] }
  0xbc   : > { %1557 = vmatpush1.bf16.xpose.msra.mxu0 %v1556_v55  ;;  %v1578_v55 = vpack.c.bf16 %v538_v49, %v536_v48  ;;  %v1462_v18 = vpack.c.bf16 %v422_v15, %v420_v14  ;;  %v550_v22 = vld [vmem:[%s2382_s10 + $0x198] sm:$0xff]  ;;  %v424_v26 = vld [vmem:[%s2376_s11 + $0x1a8] sm:$0xff]  ;;  %v1464_v29 = vpack.c.bf16 %v421_v24, %v419_v23  ;;  %v423_v35 = vld [vmem:[%s2376_s11 + $0x1a0] sm:$0xff] }
  0xbd   : > { %1559 = vmatprep.subr.bf16.mxu0 %v1558_v58  ;;  %v535_v58 = vld [vmem:[%s2382_s10 + $0x120] sm:$0xff]  ;;  %v426_v27 = vld [vmem:[%s2376_s11 + $0x1b8] sm:$0xff]  ;;  %v425_v36 = vld [vmem:[%s2376_s11 + $0x1b0] sm:$0xff] }
  0xbe   : > { %v1466_v30 = vpack.c.bf16 %v426_v27, %v424_v26  ;;  %v554_v34 = vld [vmem:[%s2382_s10 + $0x1b8] sm:$0xff]  ;;  %v428_v38 = vld [vmem:[%s2376_s11 + $0x1c8] sm:$0xff]  ;;  %v1468_v41 = vpack.c.bf16 %v425_v36, %v423_v35  ;;  %v427_v47 = vld [vmem:[%s2376_s11 + $0x1c0] sm:$0xff] }
  0xbf   : > { %v430_v39 = vld [vmem:[%s2376_s11 + $0x1d8] sm:$0xff]  ;;  %v429_v48 = vld [vmem:[%s2376_s11 + $0x1d0] sm:$0xff]  ;;  %v432_v50 = vld [vmem:[%s2376_s11 + $0x1e8] sm:$0xff] }
  0xc0   : > { %v1470_v42 = vpack.c.bf16 %v430_v39, %v428_v38  ;;  %v558_v46 = vld [vmem:[%s2382_s10 + $0x1d8] sm:$0xff]  ;;  %v1472_v53 = vpack.c.bf16 %v429_v48, %v427_v47  ;;  %v436_v62 = vld [vmem:[%s2376_s11 + $0x208] sm:$0xff]  ;;  %v2531_v14 = vld [vmem:[#allocation3] sm:$0xff] }
  0xc1   : > { %1433 = vmatpush1.bf16.xpose.msra.mxu1 %v1432_v59  ;;  %v537_v59 = vld [vmem:[%s2382_s10 + $0x130] sm:$0xff]  ;;  %v434_v51 = vld [vmem:[%s2376_s11 + $0x1f8] sm:$0xff]  ;;  %v440_v11 = vld [vmem:[%s2376_s11 + $0x228] sm:$0xff] }
  0xc2   : > { %1435 = vmatprep.subr.bf16.mxu1 %v1434_v60  ;;  %v540_v60 = vld [vmem:[%s2382_s10 + $0x148] sm:$0xff]  ;;  %v1580_v0 = vpack.c.bf16 %v537_v59, %v535_v58  ;;  %v1474_v54 = vpack.c.bf16 %v434_v51, %v432_v50  ;;  %v562_v58 = vld [vmem:[%s2382_s10 + $0x1f8] sm:$0xff]  ;;  %v431_v59 = vld [vmem:[%s2376_s11 + $0x1e0] sm:$0xff] }
  0xc3   : > { %v438_v63 = vld [vmem:[%s2376_s11 + $0x218] sm:$0xff]  ;;  %v444_v24 = vld [vmem:[%s2376_s11 + $0x248] sm:$0xff] }
  0xc4   : > { %1561 = vmatpush1.bf16.xpose.msra.mxu0 %v1560_v3  ;;  %v1582_v3 = vpack.c.bf16 %v542_v61, %v540_v60  ;;  %v433_v60 = vld [vmem:[%s2376_s11 + $0x1f0] sm:$0xff]  ;;  %v1478_v2 = vpack.c.bf16 %v438_v63, %v436_v62  ;;  %v442_v12 = vld [vmem:[%s2376_s11 + $0x238] sm:$0xff]  ;;  %v448_v36 = vld [vmem:[%s2376_s11 + $0x268] sm:$0xff] }
  0xc5   : > { %1563 = vmatprep.subr.bf16.mxu0 %v1562_v6  ;;  %v539_v6 = vld [vmem:[%s2382_s10 + $0x140] sm:$0xff]  ;;  %v1476_v1 = vpack.c.bf16 %v433_v60, %v431_v59  ;;  %v452_v48 = vld [vmem:[%s2376_s11 + $0x288] sm:$0xff] }
  0xc6   : > { %v456_v60 = vld [vmem:[%s2376_s11 + $0x2a8] sm:$0xff] }
  0xc9   : > { %1437 = vmatpush1.bf16.xpose.msra.mxu1 %v1436_v8  ;;  %v541_v8 = vld [vmem:[%s2382_s10 + $0x150] sm:$0xff] }
  0xca   : > { %1439 = vmatprep.subr.bf16.mxu1 %v1438_v9  ;;  %v544_v9 = vld [vmem:[%s2382_s10 + $0x168] sm:$0xff]  ;;  %v1584_v13 = vpack.c.bf16 %v541_v8, %v539_v6  ;;  %v435_v8 = vld [vmem:[%s2376_s11 + $0x200] sm:$0xff] }
  0xcb   : > { %v632_v6 = vld [vmem:[%s2384_s14 + $0x28] sm:$0xff] }
  0xcc   : > { %1565 = vmatpush1.bf16.xpose.msra.mxu0 %v1564_v16  ;;  %v1586_v16 = vpack.c.bf16 %v546_v10, %v544_v9  ;;  %v437_v9 = vld [vmem:[%s2376_s11 + $0x210] sm:$0xff] }
  0xcd   : > { %1567 = vmatprep.subr.bf16.mxu0 %v1566_v19  ;;  %v543_v19 = vld [vmem:[%s2382_s10 + $0x160] sm:$0xff]  ;;  %v1480_v15 = vpack.c.bf16 %v437_v9, %v435_v8  ;;  %v460_v9 = vld [vmem:[%s2376_s11 + $0x2c8] sm:$0xff] }
  0xd1   : > { %1441 = vmatpush1.bf16.xpose.msra.mxu1 %v1440_v20  ;;  %v545_v20 = vld [vmem:[%s2382_s10 + $0x170] sm:$0xff] }
  0xd2   : > { %1443 = vmatprep.subr.bf16.mxu1 %v1442_v21  ;;  %v548_v21 = vld [vmem:[%s2382_s10 + $0x188] sm:$0xff]  ;;  %v1588_v25 = vpack.c.bf16 %v545_v20, %v543_v19 }
  0xd3   : > { %v636_v19 = vld [vmem:[%s2384_s14 + $0x48] sm:$0xff] }
  0xd4   : > { %1569 = vmatpush1.bf16.xpose.msra.mxu0 %v1568_v28  ;;  %v1590_v28 = vpack.c.bf16 %v550_v22, %v548_v21  ;;  %v640_v20 = vld [vmem:[%s2384_s14 + $0x68] sm:$0xff]  ;;  %v439_v21 = vld [vmem:[%s2376_s11 + $0x220] sm:$0xff]  ;;  %v441_v22 = vld [vmem:[%s2376_s11 + $0x230] sm:$0xff] }
  0xd5   : > { %1571 = vmatprep.subr.bf16.mxu0 %v1570_v31  ;;  %v547_v31 = vld [vmem:[%s2382_s10 + $0x180] sm:$0xff]  ;;  %v1674_v26 = vpack.c.bf16 %v640_v20, %v636_v19  ;;  %v1484_v27 = vpack.c.bf16 %v441_v22, %v439_v21  ;;  %v461_v20 = vld [vmem:[%s2376_s11 + $0x2d0] sm:$0xff]  ;;  %v464_v22 = vld [vmem:[%s2376_s11 + $0x2e8] sm:$0xff] }
  0xd6   : > { %v459_v19 = vld [vmem:[%s2376_s11 + $0x2c0] sm:$0xff] }
  0xd9   : > { %1445 = vmatpush1.bf16.xpose.msra.mxu1 %v1444_v32  ;;  %v549_v32 = vld [vmem:[%s2382_s10 + $0x190] sm:$0xff] }
  0xda   : > { %1447 = vmatprep.subr.bf16.mxu1 %v1446_v33  ;;  %v552_v33 = vld [vmem:[%s2382_s10 + $0x1a8] sm:$0xff]  ;;  %v1592_v37 = vpack.c.bf16 %v549_v32, %v547_v31 }
  0xdb   : > { %v644_v31 = vld [vmem:[%s2384_s14 + $0x88] sm:$0xff] }
  0xdc   : > { %1573 = vmatpush1.bf16.xpose.msra.mxu0 %v1572_v40  ;;  %v1594_v40 = vpack.c.bf16 %v554_v34, %v552_v33  ;;  %v648_v32 = vld [vmem:[%s2384_s14 + $0xa8] sm:$0xff]  ;;  %v443_v33 = vld [vmem:[%s2376_s11 + $0x240] sm:$0xff]  ;;  %v445_v34 = vld [vmem:[%s2376_s11 + $0x250] sm:$0xff] }
  0xdd   : > { %1575 = vmatprep.subr.bf16.mxu0 %v1574_v43  ;;  %v551_v43 = vld [vmem:[%s2382_s10 + $0x1a0] sm:$0xff]  ;;  %v1678_v38 = vpack.c.bf16 %v648_v32, %v644_v31  ;;  %v1488_v39 = vpack.c.bf16 %v445_v34, %v443_v33  ;;  %v465_v32 = vld [vmem:[%s2376_s11 + $0x2f0] sm:$0xff]  ;;  %v468_v34 = vld [vmem:[%s2376_s11 + $0x308] sm:$0xff] }
  0xde   : > { %v463_v31 = vld [vmem:[%s2376_s11 + $0x2e0] sm:$0xff] }
  0xe1   : > { %1449 = vmatpush1.bf16.xpose.msra.mxu1 %v1448_v44  ;;  %v553_v44 = vld [vmem:[%s2382_s10 + $0x1b0] sm:$0xff] }
  0xe2   : > { %1451 = vmatprep.subr.bf16.mxu1 %v1450_v45  ;;  %v556_v45 = vld [vmem:[%s2382_s10 + $0x1c8] sm:$0xff]  ;;  %v1596_v49 = vpack.c.bf16 %v553_v44, %v551_v43 }
  0xe3   : > { %v652_v43 = vld [vmem:[%s2384_s14 + $0xc8] sm:$0xff] }
  0xe4   : > { %1577 = vmatpush1.bf16.xpose.msra.mxu0 %v1576_v52  ;;  %v1598_v52 = vpack.c.bf16 %v558_v46, %v556_v45  ;;  %v656_v44 = vld [vmem:[%s2384_s14 + $0xe8] sm:$0xff]  ;;  %v447_v45 = vld [vmem:[%s2376_s11 + $0x260] sm:$0xff]  ;;  %v449_v46 = vld [vmem:[%s2376_s11 + $0x270] sm:$0xff] }
  0xe5   : > { %1579 = vmatprep.subr.bf16.mxu0 %v1578_v55  ;;  %v555_v55 = vld [vmem:[%s2382_s10 + $0x1c0] sm:$0xff]  ;;  %v1682_v50 = vpack.c.bf16 %v656_v44, %v652_v43  ;;  %v1492_v51 = vpack.c.bf16 %v449_v46, %v447_v45  ;;  %v469_v44 = vld [vmem:[%s2376_s11 + $0x310] sm:$0xff]  ;;  %v472_v46 = vld [vmem:[%s2376_s11 + $0x328] sm:$0xff] }
  0xe6   : > { %v467_v43 = vld [vmem:[%s2376_s11 + $0x300] sm:$0xff] }
  0xe9   : > { %1453 = vmatpush1.bf16.xpose.msra.mxu1 %v1452_v56  ;;  %v557_v56 = vld [vmem:[%s2382_s10 + $0x1d0] sm:$0xff] }
  0xea   : > { %1455 = vmatprep.subr.bf16.mxu1 %v1454_v57  ;;  %v560_v57 = vld [vmem:[%s2382_s10 + $0x1e8] sm:$0xff]  ;;  %v1600_v61 = vpack.c.bf16 %v557_v56, %v555_v55 }
  0xeb   : > { %v660_v55 = vld [vmem:[%s2384_s14 + $0x108] sm:$0xff] }
  0xec   : > { %1581 = vmatpush1.bf16.xpose.msra.mxu0 %v1580_v0  ;;  %v1602_v0 = vpack.c.bf16 %v562_v58, %v560_v57  ;;  %v664_v56 = vld [vmem:[%s2384_s14 + $0x128] sm:$0xff]  ;;  %v451_v57 = vld [vmem:[%s2376_s11 + $0x280] sm:$0xff]  ;;  %v453_v58 = vld [vmem:[%s2376_s11 + $0x290] sm:$0xff] }
  0xed   : > { %1583 = vmatprep.subr.bf16.mxu0 %v1582_v3  ;;  %v559_v3 = vld [vmem:[%s2382_s10 + $0x1e0] sm:$0xff]  ;;  %v1686_v62 = vpack.c.bf16 %v664_v56, %v660_v55  ;;  %v1496_v63 = vpack.c.bf16 %v453_v58, %v451_v57  ;;  %v473_v56 = vld [vmem:[%s2376_s11 + $0x330] sm:$0xff]  ;;  %v476_v58 = vld [vmem:[%s2376_s11 + $0x348] sm:$0xff] }
  0xee   : > { %v471_v55 = vld [vmem:[%s2376_s11 + $0x320] sm:$0xff] }
  0xf1   : > { %1457 = vmatpush1.bf16.xpose.msra.mxu1 %v1456_v4  ;;  %v561_v4 = vld [vmem:[%s2382_s10 + $0x1f0] sm:$0xff] }
  0xf2   : > { %1459 = vmatprep.subr.bf16.mxu1 %v1458_v5  ;;  %v628_v5 = vld [vmem:[%s2384_s14 + $0x8] sm:$0xff]  ;;  %v1604_v10 = vpack.c.bf16 %v561_v4, %v559_v3 }
  0xf3   : > { %v668_v3 = vld [vmem:[%s2384_s14 + $0x148] sm:$0xff] }
  0xf4   : > { %1585 = vmatpush1.bf16.xpose.msra.mxu0 %v1584_v13  ;;  %v1670_v13 = vpack.c.bf16 %v632_v6, %v628_v5  ;;  %v672_v4 = vld [vmem:[%s2384_s14 + $0x168] sm:$0xff]  ;;  %v455_v5 = vld [vmem:[%s2376_s11 + $0x2a0] sm:$0xff]  ;;  %v457_v6 = vld [vmem:[%s2376_s11 + $0x2b0] sm:$0xff] }
  0xf5   : > { %1587 = vmatprep.subr.bf16.mxu0 %v1586_v16  ;;  %v1482_v16 = vpack.c.bf16 %v442_v12, %v440_v11  ;;  %v1690_v11 = vpack.c.bf16 %v672_v4, %v668_v3  ;;  %v1500_v12 = vpack.c.bf16 %v457_v6, %v455_v5  ;;  %v475_v3 = vld [vmem:[%s2376_s11 + $0x340] sm:$0xff]  ;;  %v477_v4 = vld [vmem:[%s2376_s11 + $0x350] sm:$0xff]  ;;  %v480_v6 = vld [vmem:[%s2376_s11 + $0x368] sm:$0xff] }
  0xf9   : > { %1461 = vmatpush1.bf16.xpose.msra.mxu1 %v1460_v17  ;;  %v627_v17 = vld [vmem:[%s2384_s14] sm:$0xff] }
  0xfa   : > { %1463 = vmatprep.subr.bf16.mxu1 %v1462_v18  ;;  %v631_v18 = vld [vmem:[%s2384_s14 + $0x20] sm:$0xff] }
  0xfb   : > { %v1672_v23 = vpack.c.bf16 %v631_v18, %v627_v17  ;;  %v676_v17 = vld [vmem:[%s2384_s14 + $0x188] sm:$0xff] }
  0xfc   : > { %1589 = vmatpush1.bf16.xpose.msra.mxu0 %v1588_v25  ;;  %v446_v25 = vld [vmem:[%s2376_s11 + $0x258] sm:$0xff]  ;;  %v680_v18 = vld [vmem:[%s2384_s14 + $0x1a8] sm:$0xff] }
  0xfd   : > { %1591 = vmatprep.subr.bf16.mxu0 %v1590_v28  ;;  %v1486_v28 = vpack.c.bf16 %v446_v25, %v444_v24  ;;  %v1694_v24 = vpack.c.bf16 %v680_v18, %v676_v17  ;;  %v1504_v25 = vpack.c.bf16 %v461_v20, %v459_v19  ;;  %v479_v17 = vld [vmem:[%s2376_s11 + $0x360] sm:$0xff]  ;;  %v481_v18 = vld [vmem:[%s2376_s11 + $0x370] sm:$0xff]  ;;  %v484_v20 = vld [vmem:[%s2376_s11 + $0x388] sm:$0xff] }
 0x101   : > { %1465 = vmatpush1.bf16.xpose.msra.mxu1 %v1464_v29  ;;  %v635_v29 = vld [vmem:[%s2384_s14 + $0x40] sm:$0xff] }
 0x102   : > { %1467 = vmatprep.subr.bf16.mxu1 %v1466_v30  ;;  %v639_v30 = vld [vmem:[%s2384_s14 + $0x60] sm:$0xff] }
 0x103   : > { %v1676_v35 = vpack.c.bf16 %v639_v30, %v635_v29  ;;  %v684_v29 = vld [vmem:[%s2384_s14 + $0x1c8] sm:$0xff] }
 0x104   : > { %1593 = vmatpush1.bf16.xpose.msra.mxu0 %v1592_v37  ;;  %v450_v37 = vld [vmem:[%s2376_s11 + $0x278] sm:$0xff]  ;;  %v688_v30 = vld [vmem:[%s2384_s14 + $0x1e8] sm:$0xff] }
 0x105   : > { %1595 = vmatprep.subr.bf16.mxu0 %v1594_v40  ;;  %v1490_v40 = vpack.c.bf16 %v450_v37, %v448_v36  ;;  %v1698_v36 = vpack.c.bf16 %v688_v30, %v684_v29  ;;  %v1508_v37 = vpack.c.bf16 %v465_v32, %v463_v31  ;;  %v483_v29 = vld [vmem:[%s2376_s11 + $0x380] sm:$0xff]  ;;  %v485_v30 = vld [vmem:[%s2376_s11 + $0x390] sm:$0xff]  ;;  %v488_v32 = vld [vmem:[%s2376_s11 + $0x3a8] sm:$0xff] }
 0x109   : > { %1469 = vmatpush1.bf16.xpose.msra.mxu1 %v1468_v41  ;;  %v643_v41 = vld [vmem:[%s2384_s14 + $0x80] sm:$0xff] }
 0x10a   : > { %1471 = vmatprep.subr.bf16.mxu1 %v1470_v42  ;;  %v647_v42 = vld [vmem:[%s2384_s14 + $0xa0] sm:$0xff] }
 0x10b   : > { %v1680_v47 = vpack.c.bf16 %v647_v42, %v643_v41  ;;  %v692_v41 = vld [vmem:[%s2384_s14 + $0x208] sm:$0xff] }
 0x10c   : > { %1597 = vmatpush1.bf16.xpose.msra.mxu0 %v1596_v49  ;;  %v454_v49 = vld [vmem:[%s2376_s11 + $0x298] sm:$0xff]  ;;  %v696_v42 = vld [vmem:[%s2384_s14 + $0x228] sm:$0xff] }
 0x10d   : > { %1599 = vmatprep.subr.bf16.mxu0 %v1598_v52  ;;  %v1494_v52 = vpack.c.bf16 %v454_v49, %v452_v48  ;;  %v1702_v48 = vpack.c.bf16 %v696_v42, %v692_v41  ;;  %v1512_v49 = vpack.c.bf16 %v469_v44, %v467_v43  ;;  %v487_v41 = vld [vmem:[%s2376_s11 + $0x3a0] sm:$0xff]  ;;  %v489_v42 = vld [vmem:[%s2376_s11 + $0x3b0] sm:$0xff]  ;;  %v492_v44 = vld [vmem:[%s2376_s11 + $0x3c8] sm:$0xff] }
 0x111   : > { %1473 = vmatpush1.bf16.xpose.msra.mxu1 %v1472_v53  ;;  %v651_v53 = vld [vmem:[%s2384_s14 + $0xc0] sm:$0xff] }
 0x112   : > { %1475 = vmatprep.subr.bf16.mxu1 %v1474_v54  ;;  %v655_v54 = vld [vmem:[%s2384_s14 + $0xe0] sm:$0xff] }
 0x113   : > { %v1684_v59 = vpack.c.bf16 %v655_v54, %v651_v53  ;;  %v700_v53 = vld [vmem:[%s2384_s14 + $0x248] sm:$0xff] }
 0x114   : > { %1601 = vmatpush1.bf16.xpose.msra.mxu0 %v1600_v61  ;;  %v458_v61 = vld [vmem:[%s2376_s11 + $0x2b8] sm:$0xff]  ;;  %v704_v54 = vld [vmem:[%s2384_s14 + $0x268] sm:$0xff] }
 0x115   : > { %1603 = vmatprep.subr.bf16.mxu0 %v1602_v0  ;;  %v1498_v0 = vpack.c.bf16 %v458_v61, %v456_v60  ;;  %v1706_v60 = vpack.c.bf16 %v704_v54, %v700_v53  ;;  %v1516_v61 = vpack.c.bf16 %v473_v56, %v471_v55  ;;  %v491_v53 = vld [vmem:[%s2376_s11 + $0x3c0] sm:$0xff]  ;;  %v493_v54 = vld [vmem:[%s2376_s11 + $0x3d0] sm:$0xff]  ;;  %v496_v56 = vld [vmem:[%s2376_s11 + $0x3e8] sm:$0xff] }
 0x119   : > { %1477 = vmatpush1.bf16.xpose.msra.mxu1 %v1476_v1  ;;  %v659_v1 = vld [vmem:[%s2384_s14 + $0x100] sm:$0xff] }
 0x11a   : > { %1479 = vmatprep.subr.bf16.mxu1 %v1478_v2  ;;  %v663_v2 = vld [vmem:[%s2384_s14 + $0x120] sm:$0xff] }
 0x11b   : > { %v1688_v8 = vpack.c.bf16 %v663_v2, %v659_v1  ;;  %v708_v1 = vld [vmem:[%s2384_s14 + $0x288] sm:$0xff] }
 0x11c   : > { %1605 = vmatpush1.bf16.xpose.msra.mxu0 %v1604_v10  ;;  %v462_v10 = vld [vmem:[%s2376_s11 + $0x2d8] sm:$0xff]  ;;  %v712_v2 = vld [vmem:[%s2384_s14 + $0x2a8] sm:$0xff] }
 0x11d   : > { %1671 = vmatprep.subr.bf16.mxu0 %v1670_v13  ;;  %v1502_v13 = vpack.c.bf16 %v462_v10, %v460_v9  ;;  %v1710_v9 = vpack.c.bf16 %v712_v2, %v708_v1  ;;  %v1520_v10 = vpack.c.bf16 %v477_v4, %v475_v3  ;;  %v495_v1 = vld [vmem:[%s2376_s11 + $0x3e0] sm:$0xff]  ;;  %v497_v2 = vld [vmem:[%s2376_s11 + $0x3f0] sm:$0xff]  ;;  %v564_v4 = vld [vmem:[%s2382_s10 + $0x208] sm:$0xff] }
 0x120   : > { %820 = vmatmul.mubr.f32.vlgmr.msra.gmra.mrb[0].mxu1 %v2531_v14 }
 0x121   : > { %1481 = vmatpush1.bf16.xpose.msra.mxu1 %v1480_v15  ;;  %890 = vmatprep.mubr.f32.mxu1 %v2439_v7  ;;  %v667_v15 = vld [vmem:[%s2384_s14 + $0x140] sm:$0xff] }
 0x122   : > { %1483 = vmatprep.subr.bf16.mxu1 %v1482_v16  ;;  %v671_v16 = vld [vmem:[%s2384_s14 + $0x160] sm:$0xff] }
 0x123   : > { %962 = vmatmul.mubr.f32.vlgmr.msra.gmra.mrb[0].mxu0 %v2531_v14  ;;  %v1692_v21 = vpack.c.bf16 %v671_v16, %v667_v15  ;;  %v716_v15 = vld [vmem:[%s2384_s14 + $0x2c8] sm:$0xff] }
 0x124   : > { %1673 = vmatpush1.bf16.xpose.msra.mxu0 %v1672_v23  ;;  %v466_v23 = vld [vmem:[%s2376_s11 + $0x2f8] sm:$0xff]  ;;  %v720_v16 = vld [vmem:[%s2384_s14 + $0x2e8] sm:$0xff] }
 0x125   : > { %1675 = vmatprep.subr.bf16.mxu0 %v1674_v26  ;;  %v1506_v26 = vpack.c.bf16 %v466_v23, %v464_v22  ;;  %v1714_v22 = vpack.c.bf16 %v720_v16, %v716_v15  ;;  %v1524_v23 = vpack.c.bf16 %v481_v18, %v479_v17  ;;  %v568_v16 = vld [vmem:[%s2382_s10 + $0x228] sm:$0xff]  ;;  %v570_v17 = vld [vmem:[%s2382_s10 + $0x238] sm:$0xff] }
 0x129   : > { %1485 = vmatpush1.bf16.xpose.msra.mxu1 %v1484_v27  ;;  %v675_v27 = vld [vmem:[%s2384_s14 + $0x180] sm:$0xff] }
 0x12a   : > { %1487 = vmatprep.subr.bf16.mxu1 %v1486_v28  ;;  %v679_v28 = vld [vmem:[%s2384_s14 + $0x1a0] sm:$0xff] }
 0x12b   : > { %v1696_v33 = vpack.c.bf16 %v679_v28, %v675_v27  ;;  %v724_v27 = vld [vmem:[%s2384_s14 + $0x308] sm:$0xff] }
 0x12c   : > { %1677 = vmatpush1.bf16.xpose.msra.mxu0 %v1676_v35  ;;  %v470_v35 = vld [vmem:[%s2376_s11 + $0x318] sm:$0xff]  ;;  %v728_v28 = vld [vmem:[%s2384_s14 + $0x328] sm:$0xff] }
 0x12d   : > { %1679 = vmatprep.subr.bf16.mxu0 %v1678_v38  ;;  %v1510_v38 = vpack.c.bf16 %v470_v35, %v468_v34  ;;  %v1718_v34 = vpack.c.bf16 %v728_v28, %v724_v27  ;;  %v1528_v35 = vpack.c.bf16 %v485_v30, %v483_v29  ;;  %v573_v27 = vld [vmem:[%s2382_s10 + $0x250] sm:$0xff]  ;;  %v576_v28 = vld [vmem:[%s2382_s10 + $0x268] sm:$0xff] }
 0x131   : > { %1489 = vmatpush1.bf16.xpose.msra.mxu1 %v1488_v39  ;;  %v683_v39 = vld [vmem:[%s2384_s14 + $0x1c0] sm:$0xff] }
 0x132   : > { %1491 = vmatprep.subr.bf16.mxu1 %v1490_v40  ;;  %v687_v40 = vld [vmem:[%s2384_s14 + $0x1e0] sm:$0xff] }
 0x133   : > { %v1700_v45 = vpack.c.bf16 %v687_v40, %v683_v39  ;;  %v732_v39 = vld [vmem:[%s2384_s14 + $0x348] sm:$0xff] }
 0x134   : > { %1681 = vmatpush1.bf16.xpose.msra.mxu0 %v1680_v47  ;;  %v474_v47 = vld [vmem:[%s2376_s11 + $0x338] sm:$0xff]  ;;  %v736_v40 = vld [vmem:[%s2384_s14 + $0x368] sm:$0xff] }
 0x135   : > { %1683 = vmatprep.subr.bf16.mxu0 %v1682_v50  ;;  %v1514_v50 = vpack.c.bf16 %v474_v47, %v472_v46  ;;  %v1722_v46 = vpack.c.bf16 %v736_v40, %v732_v39  ;;  %v1532_v47 = vpack.c.bf16 %v489_v42, %v487_v41  ;;  %v584_v39 = vld [vmem:[%s2382_s10 + $0x2a8] sm:$0xff]  ;;  %v586_v40 = vld [vmem:[%s2382_s10 + $0x2b8] sm:$0xff] }
 0x136   : > { %v1626_v42 = vpack.c.bf16 %v586_v40, %v584_v39 }
 0x139   : > { %1493 = vmatpush1.bf16.xpose.msra.mxu1 %v1492_v51  ;;  %v691_v51 = vld [vmem:[%s2384_s14 + $0x200] sm:$0xff] }
 0x13a   : > { %1495 = vmatprep.subr.bf16.mxu1 %v1494_v52  ;;  %v695_v52 = vld [vmem:[%s2384_s14 + $0x220] sm:$0xff] }
 0x13b   : > { %v1704_v57 = vpack.c.bf16 %v695_v52, %v691_v51  ;;  %v740_v51 = vld [vmem:[%s2384_s14 + $0x388] sm:$0xff] }
 0x13c   : > { %1685 = vmatpush1.bf16.xpose.msra.mxu0 %v1684_v59  ;;  %v478_v59 = vld [vmem:[%s2376_s11 + $0x358] sm:$0xff]  ;;  %v744_v52 = vld [vmem:[%s2384_s14 + $0x3a8] sm:$0xff] }
 0x13d   : > { %1687 = vmatprep.subr.bf16.mxu0 %v1686_v62  ;;  %v1518_v62 = vpack.c.bf16 %v478_v59, %v476_v58  ;;  %v1726_v58 = vpack.c.bf16 %v744_v52, %v740_v51  ;;  %v1536_v59 = vpack.c.bf16 %v493_v54, %v491_v53  ;;  %v592_v51 = vld [vmem:[%s2382_s10 + $0x2e8] sm:$0xff]  ;;  %v594_v52 = vld [vmem:[%s2382_s10 + $0x2f8] sm:$0xff] }
 0x13e   : > { %v1634_v54 = vpack.c.bf16 %v594_v52, %v592_v51 }
 0x141   : > { %1497 = vmatpush1.bf16.xpose.msra.mxu1 %v1496_v63  ;;  %v699_v63 = vld [vmem:[%s2384_s14 + $0x240] sm:$0xff] }
 0x142   : > { %1499 = vmatprep.subr.bf16.mxu1 %v1498_v0  ;;  %v703_v0 = vld [vmem:[%s2384_s14 + $0x260] sm:$0xff] }
 0x143   : > { %v1708_v5 = vpack.c.bf16 %v703_v0, %v699_v63  ;;  %v748_v63 = vld [vmem:[%s2384_s14 + $0x3c8] sm:$0xff] }
 0x144   : > { %1689 = vmatpush1.bf16.xpose.msra.mxu0 %v1688_v8  ;;  %v482_v8 = vld [vmem:[%s2376_s11 + $0x378] sm:$0xff]  ;;  %v752_v0 = vld [vmem:[%s2384_s14 + $0x3e8] sm:$0xff] }
 0x145   : > { %1691 = vmatprep.subr.bf16.mxu0 %v1690_v11  ;;  %v1522_v11 = vpack.c.bf16 %v482_v8, %v480_v6  ;;  %v1730_v6 = vpack.c.bf16 %v752_v0, %v748_v63  ;;  %v1540_v8 = vpack.c.bf16 %v497_v2, %v495_v1  ;;  %v600_v63 = vld [vmem:[%s2382_s10 + $0x328] sm:$0xff]  ;;  %v602_v0 = vld [vmem:[%s2382_s10 + $0x338] sm:$0xff] }
 0x146   : > { %v1642_v2 = vpack.c.bf16 %v602_v0, %v600_v63  ;;  %v623_v0 = vld [vmem:[%s2382_s10 + $0x3e0] sm:$0xff] }
 0x149   : > { %1501 = vmatpush1.bf16.xpose.msra.mxu1 %v1500_v12  ;;  %v707_v12 = vld [vmem:[%s2384_s14 + $0x280] sm:$0xff] }
 0x14a   : > { %1503 = vmatprep.subr.bf16.mxu1 %v1502_v13  ;;  %v711_v13 = vld [vmem:[%s2384_s14 + $0x2a0] sm:$0xff] }
 0x14b   : > { %v1712_v19 = vpack.c.bf16 %v711_v13, %v707_v12  ;;  %v563_v12 = vld [vmem:[%s2382_s10 + $0x200] sm:$0xff]  ;;  %v565_v13 = vld [vmem:[%s2382_s10 + $0x210] sm:$0xff] }
 0x14c   : > { %1693 = vmatpush1.bf16.xpose.msra.mxu0 %v1692_v21  ;;  %v486_v21 = vld [vmem:[%s2376_s11 + $0x398] sm:$0xff]  ;;  %v1608_v18 = vpack.c.bf16 %v565_v13, %v563_v12  ;;  %v608_v12 = vld [vmem:[%s2382_s10 + $0x368] sm:$0xff] }
 0x14d   : > { %1695 = vmatprep.subr.bf16.mxu0 %v1694_v24  ;;  %v1526_v24 = vpack.c.bf16 %v486_v21, %v484_v20  ;;  %v567_v20 = vld [vmem:[%s2382_s10 + $0x220] sm:$0xff]  ;;  %v569_v21 = vld [vmem:[%s2382_s10 + $0x230] sm:$0xff]  ;;  %v610_v13 = vld [vmem:[%s2382_s10 + $0x378] sm:$0xff] }
 0x151   : > { %1505 = vmatpush1.bf16.xpose.msra.mxu1 %v1504_v25  ;;  %v715_v25 = vld [vmem:[%s2384_s14 + $0x2c0] sm:$0xff] }
 0x152   : > { %1507 = vmatprep.subr.bf16.mxu1 %v1506_v26  ;;  %v719_v26 = vld [vmem:[%s2384_s14 + $0x2e0] sm:$0xff] }
 0x153   : > { %v1716_v31 = vpack.c.bf16 %v719_v26, %v715_v25  ;;  %v571_v26 = vld [vmem:[%s2382_s10 + $0x240] sm:$0xff] }
 0x154   : > { %1697 = vmatpush1.bf16.xpose.msra.mxu0 %v1696_v33  ;;  %v490_v33 = vld [vmem:[%s2376_s11 + $0x3b8] sm:$0xff]  ;;  %v1616_v29 = vpack.c.bf16 %v573_v27, %v571_v26 }
 0x155   : > { %1699 = vmatprep.subr.bf16.mxu0 %v1698_v36  ;;  %v1530_v36 = vpack.c.bf16 %v490_v33, %v488_v32  ;;  %v577_v32 = vld [vmem:[%s2382_s10 + $0x270] sm:$0xff]  ;;  %v580_v33 = vld [vmem:[%s2382_s10 + $0x288] sm:$0xff]  ;;  %v630_v26 = vld [vmem:[%s2384_s14 + $0x18] sm:$0xff] }
 0x156   : > { %v634_v27 = vld [vmem:[%s2384_s14 + $0x38] sm:$0xff] }
 0x159   : > { %1509 = vmatpush1.bf16.xpose.msra.mxu1 %v1508_v37  ;;  %v723_v37 = vld [vmem:[%s2384_s14 + $0x300] sm:$0xff] }
 0x15a   : > { %1511 = vmatprep.subr.bf16.mxu1 %v1510_v38  ;;  %v727_v38 = vld [vmem:[%s2384_s14 + $0x320] sm:$0xff] }
 0x15b   : > { %v1720_v43 = vpack.c.bf16 %v727_v38, %v723_v37  ;;  %v579_v37 = vld [vmem:[%s2382_s10 + $0x280] sm:$0xff]  ;;  %v581_v38 = vld [vmem:[%s2382_s10 + $0x290] sm:$0xff] }
 0x15c   : > { %1701 = vmatpush1.bf16.xpose.msra.mxu0 %v1700_v45  ;;  %v494_v45 = vld [vmem:[%s2376_s11 + $0x3d8] sm:$0xff]  ;;  %v1624_v41 = vpack.c.bf16 %v581_v38, %v579_v37 }
 0x15d   : > { %1703 = vmatprep.subr.bf16.mxu0 %v1702_v48  ;;  %v1534_v48 = vpack.c.bf16 %v494_v45, %v492_v44  ;;  %v585_v44 = vld [vmem:[%s2382_s10 + $0x2b0] sm:$0xff]  ;;  %v588_v45 = vld [vmem:[%s2382_s10 + $0x2c8] sm:$0xff] }
 0x161   : > { %1513 = vmatpush1.bf16.xpose.msra.mxu1 %v1512_v49  ;;  %v731_v49 = vld [vmem:[%s2384_s14 + $0x340] sm:$0xff] }
 0x162   : > { %1515 = vmatprep.subr.bf16.mxu1 %v1514_v50  ;;  %v735_v50 = vld [vmem:[%s2384_s14 + $0x360] sm:$0xff] }
 0x163   : > { %v1724_v55 = vpack.c.bf16 %v735_v50, %v731_v49  ;;  %v587_v49 = vld [vmem:[%s2382_s10 + $0x2c0] sm:$0xff]  ;;  %v589_v50 = vld [vmem:[%s2382_s10 + $0x2d0] sm:$0xff] }
 0x164   : > { %1705 = vmatpush1.bf16.xpose.msra.mxu0 %v1704_v57  ;;  %v498_v57 = vld [vmem:[%s2376_s11 + $0x3f8] sm:$0xff]  ;;  %v1632_v53 = vpack.c.bf16 %v589_v50, %v587_v49  ;;  %v624_v49 = vld [vmem:[%s2382_s10 + $0x3e8] sm:$0xff] }
 0x165   : > { %1707 = vmatprep.subr.bf16.mxu0 %v1706_v60  ;;  %v1538_v60 = vpack.c.bf16 %v498_v57, %v496_v56  ;;  %v593_v56 = vld [vmem:[%s2382_s10 + $0x2f0] sm:$0xff]  ;;  %v596_v57 = vld [vmem:[%s2382_s10 + $0x308] sm:$0xff]  ;;  %v626_v50 = vld [vmem:[%s2382_s10 + $0x3f8] sm:$0xff] }
 0x169   : > { %1517 = vmatpush1.bf16.xpose.msra.mxu1 %v1516_v61  ;;  %v739_v61 = vld [vmem:[%s2384_s14 + $0x380] sm:$0xff] }
 0x16a   : > { %1519 = vmatprep.subr.bf16.mxu1 %v1518_v62  ;;  %v743_v62 = vld [vmem:[%s2384_s14 + $0x3a0] sm:$0xff] }
 0x16b   : > { %v1728_v3 = vpack.c.bf16 %v743_v62, %v739_v61  ;;  %v595_v61 = vld [vmem:[%s2382_s10 + $0x300] sm:$0xff]  ;;  %v597_v62 = vld [vmem:[%s2382_s10 + $0x310] sm:$0xff] }
 0x16c   : > { %1709 = vmatpush1.bf16.xpose.msra.mxu0 %v1708_v5  ;;  %v566_v5 = vld [vmem:[%s2382_s10 + $0x218] sm:$0xff]  ;;  %v1640_v1 = vpack.c.bf16 %v597_v62, %v595_v61 }
 0x16d   : > { %1711 = vmatprep.subr.bf16.mxu0 %v1710_v9  ;;  %v1606_v9 = vpack.c.bf16 %v566_v5, %v564_v4  ;;  %v601_v4 = vld [vmem:[%s2382_s10 + $0x330] sm:$0xff]  ;;  %v604_v5 = vld [vmem:[%s2382_s10 + $0x348] sm:$0xff] }
 0x171   : > { %1521 = vmatpush1.bf16.xpose.msra.mxu1 %v1520_v10  ;;  %v747_v10 = vld [vmem:[%s2384_s14 + $0x3c0] sm:$0xff] }
 0x172   : > { %1523 = vmatprep.subr.bf16.mxu1 %v1522_v11  ;;  %v751_v11 = vld [vmem:[%s2384_s14 + $0x3e0] sm:$0xff] }
 0x173   : > { %v1732_v15 = vpack.c.bf16 %v751_v11, %v747_v10  ;;  %v603_v10 = vld [vmem:[%s2382_s10 + $0x340] sm:$0xff]  ;;  %v605_v11 = vld [vmem:[%s2382_s10 + $0x350] sm:$0xff] }
 0x174   : > { %1713 = vmatpush1.bf16.xpose.msra.mxu0 %v1712_v19  ;;  %v1610_v19 = vpack.c.bf16 %v570_v17, %v568_v16  ;;  %v1650_v16 = vpack.c.bf16 %v610_v13, %v608_v12  ;;  %v607_v17 = vld [vmem:[%s2382_s10 + $0x360] sm:$0xff]  ;;  %v649_v12 = vld [vmem:[%s2384_s14 + $0xb0] sm:$0xff]  ;;  %v654_v13 = vld [vmem:[%s2384_s14 + $0xd8] sm:$0xff] }
 0x175   : > { %1715 = vmatprep.subr.bf16.mxu0 %v1714_v22  ;;  %v572_v22 = vld [vmem:[%s2382_s10 + $0x248] sm:$0xff] }
 0x179   : > { %1525 = vmatpush1.bf16.xpose.msra.mxu1 %v1524_v23  ;;  %v574_v23 = vld [vmem:[%s2382_s10 + $0x258] sm:$0xff] }
 0x17a   : > { %1527 = vmatprep.subr.bf16.mxu1 %v1526_v24  ;;  %v1612_v24 = vpack.c.bf16 %v569_v21, %v567_v20  ;;  %v1614_v25 = vpack.c.bf16 %v574_v23, %v572_v22  ;;  %v612_v20 = vld [vmem:[%s2382_s10 + $0x388] sm:$0xff]  ;;  %v614_v21 = vld [vmem:[%s2382_s10 + $0x398] sm:$0xff] }
 0x17c   : > { %1717 = vmatpush1.bf16.xpose.msra.mxu0 %v1716_v31  ;;  %v575_v31 = vld [vmem:[%s2382_s10 + $0x260] sm:$0xff] }
 0x17d   : > { %1719 = vmatprep.subr.bf16.mxu0 %v1718_v34  ;;  %v582_v34 = vld [vmem:[%s2382_s10 + $0x298] sm:$0xff] }
 0x181   : > { %1529 = vmatpush1.bf16.xpose.msra.mxu1 %v1528_v35  ;;  %v1620_v35 = vpack.c.bf16 %v577_v32, %v575_v31  ;;  %v611_v31 = vld [vmem:[%s2382_s10 + $0x380] sm:$0xff]  ;;  %v613_v32 = vld [vmem:[%s2382_s10 + $0x390] sm:$0xff] }
 0x182   : > { %1531 = vmatprep.subr.bf16.mxu1 %v1530_v36  ;;  %v1622_v36 = vpack.c.bf16 %v582_v34, %v580_v33  ;;  %v616_v33 = vld [vmem:[%s2382_s10 + $0x3a8] sm:$0xff]  ;;  %v618_v34 = vld [vmem:[%s2382_s10 + $0x3b8] sm:$0xff] }
 0x184   : > { %1721 = vmatpush1.bf16.xpose.msra.mxu0 %v1720_v43  ;;  %v583_v43 = vld [vmem:[%s2382_s10 + $0x2a0] sm:$0xff] }
 0x185   : > { %1723 = vmatprep.subr.bf16.mxu0 %v1722_v46  ;;  %v590_v46 = vld [vmem:[%s2382_s10 + $0x2d8] sm:$0xff] }
 0x189   : > { %1533 = vmatpush1.bf16.xpose.msra.mxu1 %v1532_v47  ;;  %v1628_v47 = vpack.c.bf16 %v585_v44, %v583_v43  ;;  %v620_v43 = vld [vmem:[%s2382_s10 + $0x3c8] sm:$0xff]  ;;  %v622_v44 = vld [vmem:[%s2382_s10 + $0x3d8] sm:$0xff] }
 0x18a   : > { %1535 = vmatprep.subr.bf16.mxu1 %v1534_v48  ;;  %v1630_v48 = vpack.c.bf16 %v590_v46, %v588_v45  ;;  %v1662_v46 = vpack.c.bf16 %v622_v44, %v620_v43  ;;  %v698_v43 = vld [vmem:[%s2384_s14 + $0x238] sm:$0xff] }
 0x18c   : > { %1725 = vmatpush1.bf16.xpose.msra.mxu0 %v1724_v55  ;;  %v591_v55 = vld [vmem:[%s2382_s10 + $0x2e0] sm:$0xff] }
 0x18d   : > { %1727 = vmatprep.subr.bf16.mxu0 %v1726_v58  ;;  %v598_v58 = vld [vmem:[%s2382_s10 + $0x318] sm:$0xff] }
 0x191   : > { %1537 = vmatpush1.bf16.xpose.msra.mxu1 %v1536_v59  ;;  %v1636_v59 = vpack.c.bf16 %v593_v56, %v591_v55  ;;  %v1666_v55 = vpack.c.bf16 %v626_v50, %v624_v49  ;;  %v629_v56 = vld [vmem:[%s2384_s14 + $0x10] sm:$0xff]  ;;  %v706_v49 = vld [vmem:[%s2384_s14 + $0x278] sm:$0xff] }
 0x192   : > { %1539 = vmatprep.subr.bf16.mxu1 %v1538_v60  ;;  %v1638_v60 = vpack.c.bf16 %v598_v58, %v596_v57  ;;  %v633_v57 = vld [vmem:[%s2384_s14 + $0x30] sm:$0xff] }
 0x193   : > { %v1736_v63 = vpack.c.bf16 %v633_v57, %v629_v56 }
 0x194   : > { %1729 = vmatpush1.bf16.xpose.msra.mxu0 %v1728_v3  ;;  %v599_v3 = vld [vmem:[%s2382_s10 + $0x320] sm:$0xff] }
 0x195   : > { %1731 = vmatprep.subr.bf16.mxu0 %v1730_v6  ;;  %v606_v6 = vld [vmem:[%s2382_s10 + $0x358] sm:$0xff] }
 0x199   : > { %1541 = vmatpush1.bf16.xpose.msra.mxu1 %v1540_v8  ;;  %v1644_v8 = vpack.c.bf16 %v601_v4, %v599_v3  ;;  %v637_v4 = vld [vmem:[%s2384_s14 + $0x50] sm:$0xff] }
 0x19a   : > { %1607 = vmatprep.subr.bf16.mxu1 %v1606_v9  ;;  %v1646_v9 = vpack.c.bf16 %v606_v6, %v604_v5  ;;  %v641_v5 = vld [vmem:[%s2384_s14 + $0x70] sm:$0xff]  ;;  %v646_v6 = vld [vmem:[%s2384_s14 + $0x98] sm:$0xff] }
 0x19c   : > { %1733 = vmatpush1.bf16.xpose.msra.mxu0 %v1732_v15  ;;  %v1648_v15 = vpack.c.bf16 %v605_v11, %v603_v10  ;;  %v645_v11 = vld [vmem:[%s2384_s14 + $0x90] sm:$0xff] }
 0x1a0   : > { %891 = vmatmul.mubr.f32.vlgmr.msra.gmra.mrb[2].mxu1 %v2531_v14 }
 0x1a1   : > { %1609 = vmatpush1.bf16.xpose.msra.mxu1 %v1608_v18  ;;  %1032 = vmatprep.mubr.f32.mxu1 %v2439_v7  ;;  %v578_v7 = vld [vmem:[%s2382_s10 + $0x278] sm:$0xff]  ;;  %v609_v18 = vld [vmem:[%s2382_s10 + $0x370] sm:$0xff] }
 0x1a2   : > { %1611 = vmatprep.subr.bf16.mxu1 %v1610_v19  ;;  %v1618_v30 = vpack.c.bf16 %v578_v7, %v576_v28  ;;  %v1654_v28 = vpack.c.bf16 %v614_v21, %v612_v20  ;;  %v1734_v7 = vpack.c.bf16 %v634_v27, %v630_v26  ;;  %v662_v20 = vld [vmem:[%s2384_s14 + $0x118] sm:$0xff] }
 0x1a3   : > { %v666_v21 = vld [vmem:[%s2384_s14 + $0x138] sm:$0xff] }
 0x1a4   : > { %1735 = vmatprep.subr.bf16.mxu0 %v1734_v7  ;;  %v674_v26 = vld [vmem:[%s2384_s14 + $0x178] sm:$0xff]  ;;  %v669_v7 = vld [vmem:[%s2384_s14 + $0x150] sm:$0xff] }
 0x1a9   : > { %1613 = vmatpush1.bf16.xpose.msra.mxu1 %v1612_v24 }
 0x1aa   : > { %1615 = vmatprep.subr.bf16.mxu1 %v1614_v25  ;;  %v1652_v25 = vpack.c.bf16 %v609_v18, %v607_v17  ;;  %v653_v18 = vld [vmem:[%s2384_s14 + $0xd0] sm:$0xff] }
 0x1b1   : > { %1617 = vmatpush1.bf16.xpose.msra.mxu1 %v1616_v29 }
 0x1b2   : > { %1619 = vmatprep.subr.bf16.mxu1 %v1618_v30 }
 0x1b9   : > { %1621 = vmatpush1.bf16.xpose.msra.mxu1 %v1620_v35  ;;  %v1656_v35 = vpack.c.bf16 %v613_v32, %v611_v31  ;;  %v682_v31 = vld [vmem:[%s2384_s14 + $0x1b8] sm:$0xff] }
 0x1ba   : > { %1623 = vmatprep.subr.bf16.mxu1 %v1622_v36  ;;  %v1658_v36 = vpack.c.bf16 %v618_v34, %v616_v33  ;;  %v677_v34 = vld [vmem:[%s2384_s14 + $0x190] sm:$0xff] }
 0x1c1   : > { %1625 = vmatpush1.bf16.xpose.msra.mxu1 %v1624_v41  ;;  %v615_v41 = vld [vmem:[%s2382_s10 + $0x3a0] sm:$0xff] }
 0x1c2   : > { %1627 = vmatprep.subr.bf16.mxu1 %v1626_v42  ;;  %v617_v42 = vld [vmem:[%s2382_s10 + $0x3b0] sm:$0xff] }
 0x1c3   : > { %v1660_v45 = vpack.c.bf16 %v617_v42, %v615_v41  ;;  %v689_v41 = vld [vmem:[%s2384_s14 + $0x1f0] sm:$0xff]  ;;  %v694_v42 = vld [vmem:[%s2384_s14 + $0x218] sm:$0xff] }
 0x1c9   : > { %1629 = vmatpush1.bf16.xpose.msra.mxu1 %v1628_v47  ;;  %v619_v47 = vld [vmem:[%s2382_s10 + $0x3c0] sm:$0xff] }
 0x1ca   : > { %1631 = vmatprep.subr.bf16.mxu1 %v1630_v48  ;;  %v621_v48 = vld [vmem:[%s2382_s10 + $0x3d0] sm:$0xff] }
 0x1cb   : > { %v1664_v52 = vpack.c.bf16 %v621_v48, %v619_v47  ;;  %v697_v47 = vld [vmem:[%s2384_s14 + $0x230] sm:$0xff]  ;;  %v702_v48 = vld [vmem:[%s2384_s14 + $0x258] sm:$0xff] }
 0x1d1   : > { %1633 = vmatpush1.bf16.xpose.msra.mxu1 %v1632_v53 }
 0x1d2   : > { %1635 = vmatprep.subr.bf16.mxu1 %v1634_v54 }
 0x1d9   : > { %1637 = vmatpush1.bf16.xpose.msra.mxu1 %v1636_v59  ;;  %v638_v59 = vld [vmem:[%s2384_s14 + $0x58] sm:$0xff] }
 0x1da   : > { %1639 = vmatprep.subr.bf16.mxu1 %v1638_v60  ;;  %v642_v60 = vld [vmem:[%s2384_s14 + $0x78] sm:$0xff] }
 0x1e1   : > { %1641 = vmatpush1.bf16.xpose.msra.mxu1 %v1640_v1  ;;  %v625_v1 = vld [vmem:[%s2382_s10 + $0x3f0] sm:$0xff] }
 0x1e2   : > { %1643 = vmatprep.subr.bf16.mxu1 %v1642_v2  ;;  %v1738_v2 = vpack.c.bf16 %v642_v60, %v638_v59  ;;  %v1668_v3 = vpack.c.bf16 %v625_v1, %v623_v0  ;;  %v713_v59 = vld [vmem:[%s2384_s14 + $0x2b0] sm:$0xff]  ;;  %v718_v60 = vld [vmem:[%s2384_s14 + $0x2d8] sm:$0xff] }
 0x1e3   : > { %v717_v0 = vld [vmem:[%s2384_s14 + $0x2d0] sm:$0xff] }
 0x1e4   : > { %v721_v1 = vld [vmem:[%s2384_s14 + $0x2f0] sm:$0xff] }
 0x1e9   : > { %1645 = vmatpush1.bf16.xpose.msra.mxu1 %v1644_v8  ;;  %v650_v8 = vld [vmem:[%s2384_s14 + $0xb8] sm:$0xff] }
 0x1ea   : > { %1647 = vmatprep.subr.bf16.mxu1 %v1646_v9  ;;  %v1740_v9 = vpack.c.bf16 %v641_v5, %v637_v4  ;;  %v1742_v10 = vpack.c.bf16 %v650_v8, %v646_v6  ;;  %v1780_v4 = vpack.c.bf16 %v721_v1, %v717_v0  ;;  %v725_v6 = vld [vmem:[%s2384_s14 + $0x310] sm:$0xff] }
 0x1eb   : > { %v729_v8 = vld [vmem:[%s2384_s14 + $0x330] sm:$0xff] }
 0x1f1   : > { %1649 = vmatpush1.bf16.xpose.msra.mxu1 %v1648_v15  ;;  %v658_v15 = vld [vmem:[%s2384_s14 + $0xf8] sm:$0xff] }
 0x1f2   : > { %1651 = vmatprep.subr.bf16.mxu1 %v1650_v16  ;;  %v1744_v16 = vpack.c.bf16 %v649_v12, %v645_v11  ;;  %v1746_v17 = vpack.c.bf16 %v658_v15, %v654_v13  ;;  %v1784_v11 = vpack.c.bf16 %v729_v8, %v725_v6 }
 0x1f3   : > { %v821_v19 = vpop.f32.mrb[0].mxu1 }
 0x1f4   : > { %v1402_v22 = vmul.f32 -1.442695, %v821_v19  ;;  %v823_v23 = vpop.f32.mrb[1].mxu1 }
 0x1f5   : > { %v1403_v24 = vmul.f32 -1.442695, %v823_v23 }
 0x1f6   : > { %1888 = vpow2.f32 %v1402_v22  ;;  %v963_v29 = vpop.f32.mrb[0].mxu0 }
 0x1f7   : > { %1890 = vpow2.f32 %v1403_v24  ;;  %v965_v30 = vpop.f32.mrb[1].mxu0  ;;  %v661_v24 = vld [vmem:[%s2384_s14 + $0x110] sm:$0xff] }
 0x1f9   : > { %1653 = vmatpush1.bf16.xpose.msra.mxu1 %v1652_v25  ;;  %v670_v25 = vld [vmem:[%s2384_s14 + $0x158] sm:$0xff] }
 0x1fa   : > { %1655 = vmatprep.subr.bf16.mxu1 %v1654_v28  ;;  %v1754_v28 = vpack.c.bf16 %v674_v26, %v670_v25  ;;  %v741_v26 = vld [vmem:[%s2384_s14 + $0x390] sm:$0xff] }
 0x200   : > { %v1889_v37 = vpop.eup %1888 }
 0x201   : > { %v1891_v38 = vpop.eup %1890  ;;  %v1051_v39 = vadd.f32 1.0, %v1889_v37  ;;  %1657 = vmatpush1.bf16.xpose.msra.mxu1 %v1656_v35  ;;  %v681_v35 = vld [vmem:[%s2384_s14 + $0x1b0] sm:$0xff]  ;;  %v690_v37 = vld [vmem:[%s2384_s14 + $0x1f8] sm:$0xff] }
 0x202   : > { %v1052_v40 = vadd.f32 1.0, %v1891_v38  ;;  %1659 = vmatprep.subr.bf16.mxu1 %v1658_v36  ;;  %v686_v36 = vld [vmem:[%s2384_s14 + $0x1d8] sm:$0xff]  ;;  %v1760_v38 = vpack.c.bf16 %v681_v35, %v677_v34 }
 0x203   : > { %1892 = vrcp.f32 %v1051_v39  ;;  %v1762_v39 = vpack.c.bf16 %v690_v37, %v686_v36 }
 0x204   : > { %1894 = vrcp.f32 %v1052_v40  ;;  %v685_v40 = vld [vmem:[%s2384_s14 + $0x1d0] sm:$0xff] }
 0x205   : > { %v1764_v44 = vpack.c.bf16 %v689_v41, %v685_v40 }
 0x209   : > { %1661 = vmatpush1.bf16.xpose.msra.mxu1 %v1660_v45  ;;  %v1766_v45 = vpack.c.bf16 %v698_v43, %v694_v42 }
 0x20a   : > { %1663 = vmatprep.subr.bf16.mxu1 %v1662_v46  ;;  %v693_v46 = vld [vmem:[%s2384_s14 + $0x210] sm:$0xff] }
 0x20b   : > { %v1768_v50 = vpack.c.bf16 %v697_v47, %v693_v46 }
 0x20d   : > { %v1893_v51 = vpop.eup %1892 }
 0x20e   : > { %v1895_v53 = vpop.eup %1894  ;;  %v1063_v54 = vmul.f32 %v1893_v51, %v821_v19  ;;  %v657_v19 = vld [vmem:[%s2384_s14 + $0xf0] sm:$0xff]  ;;  %v1770_v51 = vpack.c.bf16 %v706_v49, %v702_v48 }
 0x20f   : > { %v1064_v58 = vmul.f32 %v1895_v53, %v823_v23  ;;  %v1748_v22 = vpack.c.bf16 %v657_v19, %v653_v18  ;;  %v1750_v23 = vpack.c.bf16 %v666_v21, %v662_v20  ;;  %v705_v53 = vld [vmem:[%s2384_s14 + $0x270] sm:$0xff]  ;;  %v742_v18 = vld [vmem:[%s2384_s14 + $0x398] sm:$0xff]  ;;  %v1214_v20 = vlaneseq }
 0x210   : > { %v1067_v61 = vmul.f32 %v1063_v54, %v963_v29  ;;  %v673_v29 = vld [vmem:[%s2384_s14 + $0x170] sm:$0xff]  ;;  %v710_v54 = vld [vmem:[%s2384_s14 + $0x298] sm:$0xff] }
 0x211   : > { %v1068_v62 = vmul.f32 %v1064_v58, %v965_v30  ;;  %1665 = vmatpush1.bf16.xpose.msra.mxu1 %v1664_v52  ;;  %v678_v30 = vld [vmem:[%s2384_s14 + $0x198] sm:$0xff]  ;;  %v1756_v32 = vpack.c.bf16 %v673_v29, %v669_v7  ;;  %v701_v52 = vld [vmem:[%s2384_s14 + $0x250] sm:$0xff] }
 0x212   : > { %1667 = vmatprep.subr.bf16.mxu1 %v1666_v55  ;;  %v1758_v33 = vpack.c.bf16 %v682_v31, %v678_v30  ;;  %v714_v55 = vld [vmem:[%s2384_s14 + $0x2b8] sm:$0xff]  ;;  %v1772_v56 = vpack.c.bf16 %v705_v53, %v701_v52  ;;  %v709_v58 = vld [vmem:[%s2384_s14 + $0x290] sm:$0xff] }
 0x213   : > { %1135 = vmatprep.mubr.f32.mxu0 %v1068_v62  ;;  %v1774_v57 = vpack.c.bf16 %v714_v55, %v710_v54  ;;  %v1776_v62 = vpack.c.bf16 %v713_v59, %v709_v58  ;;  %v746_v19 = vld [vmem:[%s2384_s14 + $0x3b8] sm:$0xff]  ;;  %v1224_v54 = vld [vmem:[#allocation2 + $0x8] sm:$0xff] }
 0x214   : > { %1136 = vmatmul.mubr.f32.vlgmr.msra.gmra.mrb[2].mxu0 %v1067_v61  ;;  %v722_v61 = vld [vmem:[%s2384_s14 + $0x2f8] sm:$0xff] }
 0x215   : > { %1737 = vmatpush1.bf16.xpose.msra.mxu0 %v1736_v63  ;;  %v1778_v63 = vpack.c.bf16 %v722_v61, %v718_v60  ;;  %v750_v7 = vld [vmem:[%s2384_s14 + $0x3d8] sm:$0xff] }
 0x216   : > { %1739 = vmatprep.subr.bf16.mxu0 %v1738_v2  ;;  %v726_v2 = vld [vmem:[%s2384_s14 + $0x318] sm:$0xff] }
 0x217   : > { %v754_v29 = vld [vmem:[%s2384_s14 + $0x3f8] sm:$0xff] }
 0x218   : > { %v1794_v31 = vpack.c.bf16 %v754_v29, %v750_v7 }
 0x219   : > { %1669 = vmatpush1.bf16.xpose.msra.mxu1 %v1668_v3  ;;  %v730_v3 = vld [vmem:[%s2384_s14 + $0x338] sm:$0xff] }
 0x21a   : > { %v1782_v5 = vpack.c.bf16 %v730_v3, %v726_v2 }
 0x21d   : > { %1741 = vmatpush1.bf16.xpose.msra.mxu0 %v1740_v9  ;;  %v734_v9 = vld [vmem:[%s2384_s14 + $0x358] sm:$0xff] }
 0x21e   : > { %1743 = vmatprep.subr.bf16.mxu0 %v1742_v10  ;;  %v738_v10 = vld [vmem:[%s2384_s14 + $0x378] sm:$0xff] }
 0x21f   : > { %v1786_v12 = vpack.c.bf16 %v738_v10, %v734_v9 }
 0x220   : > { %1033 = vmatmul.mubr.f32.vlgmr.msra.gmra.mrb[4].mxu1 %v2531_v14  ;;  %v665_v14 = vld [vmem:[%s2384_s14 + $0x130] sm:$0xff] }
 0x221   : > { %v1752_v27 = vpack.c.bf16 %v665_v14, %v661_v24  ;;  %v1213_v24 = vld [vmem:[%s2837_s4] sm:$0xff]  ;;  %v1215_v14 = vand.u32 127, %v1214_v20 }
 0x225   : > { %1745 = vmatpush1.bf16.xpose.msra.mxu0 %v1744_v16  ;;  %v733_v16 = vld [vmem:[%s2384_s14 + $0x350] sm:$0xff] }
 0x226   : > { %1747 = vmatprep.subr.bf16.mxu0 %v1746_v17  ;;  %v737_v17 = vld [vmem:[%s2384_s14 + $0x370] sm:$0xff] }
 0x227   : > { %v1788_v21 = vpack.c.bf16 %v737_v17, %v733_v16 }
 0x22d   : > { %1749 = vmatpush1.bf16.xpose.msra.mxu0 %v1748_v22  ;;  %v1216_v22 = vstv %s2102_s21 }
 0x22e   : > { %1751 = vmatprep.subr.bf16.mxu0 %v1750_v23  ;;  %v1790_v23 = vpack.c.bf16 %v746_v19, %v742_v18  ;;  %vm1217_vm1 = vcmp.eq.s32.totalorder %v1215_v14, %v1216_v22 }
 0x22f   : > { %v1218_v25 = vsel %vm1217_vm1, %v1213_v24, 0.0 }
 0x235   : > { %1753 = vmatpush1.bf16.xpose.msra.mxu0 %v1752_v27  ;;  %v745_v27 = vld [vmem:[%s2384_s14 + $0x3b0] sm:$0xff] }
 0x236   : > { %1755 = vmatprep.subr.bf16.mxu0 %v1754_v28  ;;  %v1220_v28 = vsel %vm1219_vm0, %v1218_v25, 0.0  ;;  %v1792_v30 = vpack.c.bf16 %v745_v27, %v741_v26 }
 0x237   : > { %1221 = vadd.xlane.f32.xlu0 %v1220_v28 }
 0x23d   : > { %1757 = vmatpush1.bf16.xpose.msra.mxu0 %v1756_v32  ;;  %v749_v32 = vld [vmem:[%s2384_s14 + $0x3d0] sm:$0xff] }
 0x23e   : > { %1759 = vmatprep.subr.bf16.mxu0 %v1758_v33  ;;  %v753_v33 = vld [vmem:[%s2384_s14 + $0x3f0] sm:$0xff] }
 0x23f   : > { %v1796_v34 = vpack.c.bf16 %v753_v33, %v749_v32 }
 0x245   : > { %1761 = vmatpush1.bf16.xpose.msra.mxu0 %v1760_v38 }
 0x246   : > { %1763 = vmatprep.subr.bf16.mxu0 %v1762_v39 }
 0x24d   : > { %1765 = vmatpush1.bf16.xpose.msra.mxu0 %v1764_v44 }
 0x24e   : > { %1767 = vmatprep.subr.bf16.mxu0 %v1766_v45 }
 0x255   : > { %1769 = vmatpush1.bf16.xpose.msra.mxu0 %v1768_v50 }
 0x256   : > { %1771 = vmatprep.subr.bf16.mxu0 %v1770_v51  ;;  %v1223_v51 = vld [vmem:[#allocation2] sm:$0xff] }
 0x25d   : > { %1773 = vmatpush1.bf16.xpose.msra.mxu0 %v1772_v56 }
 0x25e   : > { %1775 = vmatprep.subr.bf16.mxu0 %v1774_v57 }
 0x265   : > { %1777 = vmatpush1.bf16.xpose.msra.mxu0 %v1776_v62 }
 0x266   : > { %1779 = vmatprep.subr.bf16.mxu0 %v1778_v63 }
 0x26d   : > { %1781 = vmatpush1.bf16.xpose.msra.mxu0 %v1780_v4 }
 0x26e   : > { %1783 = vmatprep.subr.bf16.mxu0 %v1782_v5 }
 0x273   : > { %v892_v13 = vpop.f32.mrb[2].mxu1 }
 0x274   : > { %v894_v15 = vpop.f32.mrb[3].mxu1  ;;  %v1404_v35 = vmul.f32 -1.442695, %v892_v13 }
 0x275   : > { %1785 = vmatpush1.bf16.xpose.msra.mxu0 %v1784_v11  ;;  %v1405_v36 = vmul.f32 -1.442695, %v894_v15 }
 0x276   : > { %1787 = vmatprep.subr.bf16.mxu0 %v1786_v12  ;;  %1896 = vpow2.f32 %v1404_v35 }
 0x277   : > { %1898 = vpow2.f32 %v1405_v36 }
 0x27d   : > { %1789 = vmatpush1.bf16.xpose.msra.mxu0 %v1788_v21 }
 0x27e   : > { %1791 = vmatprep.subr.bf16.mxu0 %v1790_v23 }
 0x280   : > { %v1897_v37 = vpop.eup %1896 }
 0x281   : > { %v1899_v38 = vpop.eup %1898  ;;  %v1053_v39 = vadd.f32 1.0, %v1897_v37 }
 0x282   : > { %v1054_v40 = vadd.f32 1.0, %v1899_v38 }
 0x283   : > { %1900 = vrcp.f32 %v1053_v39 }
 0x284   : > { %1902 = vrcp.f32 %v1054_v40 }
 0x285   : > { %1793 = vmatpush1.bf16.xpose.msra.mxu0 %v1792_v30 }
 0x286   : > { %1795 = vmatprep.subr.bf16.mxu0 %v1794_v31 }
 0x28d   : > { %1797 = vmatpush1.bf16.xpose.msra.mxu0 %v1796_v34  ;;  %v1901_v41 = vpop.eup %1900 }
 0x28e   : > { %v1903_v42 = vpop.eup %1902  ;;  %v1065_v43 = vmul.f32 %v1901_v41, %v892_v13 }
 0x28f   : > { %v1066_v44 = vmul.f32 %v1903_v42, %v894_v15 }
 0x2c4   : > { %v1222_v49 = vpop.xlane.xlu0 %1221 }
 0x2f3   : > { %v1034_v45 = vpop.f32.mrb[4].mxu1 }
 0x2f4   : > { %v1069_v46 = vmul.f32 %v1065_v43, %v1034_v45  ;;  %v1036_v47 = vpop.f32.mrb[5].mxu1 }
 0x2f5   : > { %v1070_v48 = vmul.f32 %v1066_v44, %v1036_v47 }
 0x2f7   : > { %1206 = vmatprep.mubr.f32.mxu0 %v1070_v48 }
 0x2f8   : > { %1207 = vmatmul.mubr.f32.vlgmr.msra.gmra.mrb[2].mxu0 %v1069_v46 }
 0x3cb   : > { %v1208_v50 = vpop.f32.mrb[2].mxu0  ;;  %1234 = sbr.rel (%p1406_p4) target bundleno = 986 (0x3da), region = 64 }
 0x3cc   : > { %v1225_v52 = vmul.f32 %v1222_v49, %v1208_v50  ;;  %v1210_v53 = vpop.f32.mrb[3].mxu0 }
 0x3cd   : > { %v1226_v55 = vmul.f32 %v1222_v49, %v1210_v53 }
 0x3ce   : > { %v1227_v56 = vadd.f32 %v1225_v52, %v1223_v51 }
 0x3cf   : > { %v1228_v57 = vadd.f32 %v1226_v55, %v1224_v54 }
 0x3d0   : > { %1229 = vst [vmem:[#allocation2] sm:$0xff] %v1227_v56 }
 0x3d1   : > { %1230 = vst [vmem:[#allocation2 + $0x8] sm:$0xff] %v1228_v57 }
 0x3d7   : > { %v1235_v58 = vld [vmem:[#allocation2] sm:$0xff] }
 0x3d8   : > { %v1236_v59 = vld [vmem:[#allocation2 + $0x8] sm:$0xff]  ;;  %1237 = vst [vmem:[#allocation11] sm:$0xff] %v1235_v58 }
 0x3d9   : > { %1238 = vst [vmem:[#allocation11 + $0x8] sm:$0xff] %v1236_v59 }
 0x3da PF: > { %p1831_p7 = scmp.eq.s32.totalorder %s2251_s25, 15  ;;  %s2121_s18 = smov [#allocation11]  }
 0x3db   : > { %s1249_s29 = sshll.u32 %s2121_s18, 4  ;;  %s1250_s29 = int_to_ptr.vmem [resolvable:$true] %s1249_s29 }
 0x3dc   : > { %s2022_s1 = scalar_lea.vmem %s1250_s29, 256  ;;  %p2029_p6 = scmp.lt.s32.totalorder %s1250_s29, %s1250_s29 }
 0x3dd   : > { %p2023_p9 = scmp.ne.s32.totalorder %s1250_s29, %s2022_s1  ;;  %p2030_p13 = scmp.lt.s32.totalorder %s2022_s1, %s2022_s1 }
 0x3df   : > { %p2024_p12 = pnand %p2023_p9, %p1831_p7  ;;  %p2031_p3 = por %p2030_p13, %p2029_p6 }
 0x3e1   : > { %p2025_p10 = pneg %p2024_p12 }
 0x3e3   : > { %p2032_p2 = pnand %p2031_p3, %p2025_p10 }
 0x3e5   : > { %2035 = shalt.err (!%p2032_p2)
}
 0x3e6   : > { %s2036_s6 = scalar_lea.hbm %s2838_s5, 256 }
 0x3e7   : > { %p2037_p8 = scmp.ne.s32.totalorder %s2838_s5, %s2036_s6  ;;  %p2042_p0 = scmp.lt.u32.totalorder %s2036_s6, %s2838_s5 }
 0x3e9   : > { %p2038_p5 = pnand %p2037_p8, %p1831_p7 }
 0x3eb   : > { %p2039_p11 = pneg %p2038_p5 }
 0x3ed   : > { %p2044_p1 = pnand %p2042_p0, %p2039_p11 }
 0x3ef   : > { %2047 = shalt.err (!%p2044_p1)
}
 0x3f0   : > { %1811 = dma.vmem_to_hbm [thread:$0]  (%p1831_p7), %s1250_s29, 256, %s2838_s5, [#allocation5]  }
 0x3f1   : > { %2085 = dma.done.wait (%p1831_p7), [#allocation5], 256  }
 0x3f2   : > { %2087 = vsyncadd (%p1831_p7), [#allocation5], 4294967040 }
 0x3f3 PF: > { %s23_s23 = sadd.s32 1, %s2110_s23   ;;  %s2870_s9 = sld [smem:[#allocation16_spill]] }
 0x3f4   : > { %p20_p4 = scmp.ge.s32.totalorder %s23_s23, 18   ;;  %s2871_s18 = smov %s2094_s19 }
 0x3f5   : > { %s2872_s19 = smov %s2098_s20  ;;  %s2873_s20 = smov %s2198_s30 }
 0x3f6   : > { %s2874_s21 = smov %s2106_s22  ;;  %22 = sbr.rel (!%p20_p4) target bundleno = 11 (0xb), region = 119 }
 0x3f9   : > { %s2875_s22 = smov %s2870_s9 }
 0x3fd   :  { %1262 = vsyncpa [#allocation4], 1 }
 0x3fe   :  { %1264 = vsyncpa [#allocation4 + $0x1], 1 }
 0x3ff   :  { %1265 = vsyncpa [#allocation7], 1 }
 0x400   :  { %1267 = vsyncpa [#allocation7 + $0x1], 1 }
 0x401   :  { %1268 = vsyncpa [#allocation10], 1 }
 0x402   :  { %1270 = vsyncpa [#allocation10 + $0x1], 1 }
 0x403   :  { %1271 = vsyncpa [#allocation5], 1 }
 0x404   :  { %1273 = vsyncpa [#allocation5 + $0x1], 1 }

</bundles_post_ra>
